<compile_context>
chip_gen: v6e
topology: v6e:2x2x1
jax: 0.10.0
libtpu: 0.0.40
codegen_flags: <defaults>
</compile_context>

<pallas_src>
import math
import functools

import jax
import jax.numpy as jnp
from jax.experimental import pallas as pl
from jax.experimental.pallas import tpu as pltpu


def make_divisible(v, divisor=8, min_value=None):
    if min_value is None:
        min_value = divisor
    new_v = max(min_value, int(v + divisor / 2) // divisor * divisor)
    if new_v < 0.9 * v:
        new_v += divisor
    return new_v


# ----------------------------- fused kernel -----------------------------

def inverted_residual_kernel(x_ref,
                             w_exp_ref, s_exp_ref, b_exp_ref,
                             w_dw_ref, s_dw_ref, b_dw_ref,
                             w_red_ref, s_red_ref, b_red_ref,
                             o_ref,
                             zpad_ref,
                             *, has_expand, use_res):
    _, H, W, C_in = x_ref.shape
    hidden = w_dw_ref.shape[-1]
    C_out = o_ref.shape[-1]

    x = x_ref[0].astype(jnp.float32)                  # (H, W, C_in)
    x2d = x.reshape(H * W, C_in)

    # ---- exp_1x1: pointwise conv + folded BN + SiLU ----
    if has_expand:
        z = jnp.dot(x2d, w_exp_ref[...], preferred_element_type=jnp.float32)
        z = z * s_exp_ref[...] + b_exp_ref[...]
        z = z * jax.nn.sigmoid(z)                     # SiLU
    else:
        z = x2d                                       # expand_ratio == 1: no layer

    # ---- conv_3x3: depthwise, stride 1, pad 1 (zero pad) + folded BN + SiLU ----
    # TODO(synk): stride=2 downsampling path not implemented; stride=1 covers
    # the residual configuration exercised here.
    zpad_ref[...] = jnp.zeros_like(zpad_ref)
    zpad_ref[pl.ds(1, H), pl.ds(1, W), :] = z.reshape(H, W, hidden)
    acc = jnp.zeros((H, W, hidden), jnp.float32)
    for dy in range(3):                               # 9 static taps, VPU MACs
        for dx in range(3):
            tap = w_dw_ref[pl.ds(dy, 1), pl.ds(dx, 1), :]       # (1, 1, hidden)
            acc = acc + zpad_ref[pl.ds(dy, H), pl.ds(dx, W), :] * tap
    y = acc.reshape(H * W, hidden)
    y = y * s_dw_ref[...] + b_dw_ref[...]
    y = y * jax.nn.sigmoid(y)                         # SiLU

    # ---- red_1x1: pointwise conv + folded BN (no activation) ----
    out = jnp.dot(y, w_red_ref[...], preferred_element_type=jnp.float32)
    out = out * s_red_ref[...] + b_red_ref[...]

    if use_res:
        out = out + x2d

    o_ref[0] = out.reshape(H, W, C_out).astype(o_ref.dtype)


# ----------------------------- wrapper -----------------------------

def _full_spec(arr):
    nd = arr.ndim
    return pl.BlockSpec(arr.shape, lambda i, _nd=nd: (0,) * _nd)


def inverted_residual_forward(x_nchw, params, *, stride, expand_ratio,
                              skip_connection=True):
    N, C_in, H, W = x_nchw.shape
    assert stride == 1, "stride=2 not implemented in the Pallas kernel"
    has_expand = expand_ratio != 1
    hidden = params['w_dw'].shape[0]
    C_out = params['w_red'].shape[0]
    use_res = (stride == 1) and (C_in == C_out) and skip_connection

    eps = 1e-5

    def fold_bn(bn):
        scale = bn['gamma'] * jax.lax.rsqrt(bn['var'] + eps)
        bias = bn['beta'] - bn['mean'] * scale
        return scale[None, :], bias[None, :]

    # Pre-transpose weights to matmul-friendly (K, N) layouts; fold BN. (glue)
    if has_expand:
        w_exp_t = jnp.transpose(params['w_exp'][:, :, 0, 0], (1, 0))  # (C_in, hidden)
        s_exp, b_exp = fold_bn(params['bn_exp'])
    else:
        w_exp_t = jnp.zeros((1, 1), jnp.float32)
        s_exp = jnp.zeros((1, 1), jnp.float32)
        b_exp = jnp.zeros((1, 1), jnp.float32)
    w_dw_t = jnp.transpose(params['w_dw'][:, 0, :, :], (1, 2, 0))      # (3, 3, hidden)
    s_dw, b_dw = fold_bn(params['bn_dw'])
    w_red_t = jnp.transpose(params['w_red'][:, :, 0, 0], (1, 0))       # (hidden, C_out)
    s_red, b_red = fold_bn(params['bn_red'])

    x_nhwc = jnp.transpose(x_nchw, (0, 2, 3, 1))                       # NCHW -> NHWC (glue)

    weight_args = (w_exp_t, s_exp, b_exp,
                   w_dw_t, s_dw, b_dw,
                   w_red_t, s_red, b_red)

    out_nhwc = pl.pallas_call(
        functools.partial(inverted_residual_kernel,
                          has_expand=has_expand, use_res=use_res),
        out_shape=jax.ShapeDtypeStruct((N, H, W, C_out), x_nchw.dtype),
        grid_spec=pltpu.PrefetchScalarGridSpec(
            num_scalar_prefetch=0,
            grid=(N,),
            in_specs=[pl.BlockSpec((1, H, W, C_in), lambda i: (i, 0, 0, 0))]
                     + [_full_spec(a) for a in weight_args],
            out_specs=pl.BlockSpec((1, H, W, C_out), lambda i: (i, 0, 0, 0)),
            scratch_shapes=[pltpu.VMEM((H + 2, W + 2, hidden), jnp.float32)],
        ),
        compiler_params=pltpu.CompilerParams(
            dimension_semantics=("parallel",)),
    )(x_nhwc, *weight_args)

    return jnp.transpose(out_nhwc, (0, 3, 1, 2))                       # NHWC -> NCHW (glue)


# ----------------------------- params / reference -----------------------------

def init_params(key, in_channels, out_channels, expand_ratio):
    hidden = make_divisible(int(round(in_channels * expand_ratio)), 8)
    keys = jax.random.split(key, 6)

    def bn_params(k, c):
        k1, k2, k3, k4 = jax.random.split(k, 4)
        return dict(
            gamma=1.0 + 0.1 * jax.random.normal(k1, (c,), jnp.float32),
            beta=0.1 * jax.random.normal(k2, (c,), jnp.float32),
            mean=0.1 * jax.random.normal(k3, (c,), jnp.float32),
            var=jax.random.uniform(k4, (c,), jnp.float32, minval=0.5, maxval=1.5),
        )

    p = dict(
        w_dw=0.2 * jax.random.normal(keys[2], (hidden, 1, 3, 3), jnp.float32),
        bn_dw=bn_params(keys[3], hidden),
        w_red=0.05 * jax.random.normal(keys[4], (out_channels, hidden, 1, 1), jnp.float32),
        bn_red=bn_params(keys[5], out_channels),
    )
    if expand_ratio != 1:
        p['w_exp'] = 0.05 * jax.random.normal(keys[0], (hidden, in_channels, 1, 1),
                                              jnp.float32)
        p['bn_exp'] = bn_params(keys[1], hidden)
    return p


def reference_forward(x, params, *, stride, expand_ratio, skip_connection=True):
    """Pure-JAX (lax.conv) reference with PyTorch eval-mode BN semantics."""
    eps = 1e-5
    hp = jax.lax.Precision.HIGHEST

    def bn(v, p):
        return ((v - p['mean'][None, :, None, None])
                * jax.lax.rsqrt(p['var'][None, :, None, None] + eps)
                * p['gamma'][None, :, None, None]
                + p['beta'][None, :, None, None])

    def silu(v):
        return v * jax.nn.sigmoid(v)

    out = x
    if expand_ratio != 1:
        out = jax.lax.conv_general_dilated(
            out, params['w_exp'], window_strides=(1, 1), padding=((0, 0), (0, 0)),
            dimension_numbers=('NCHW', 'OIHW', 'NCHW'), precision=hp)
        out = silu(bn(out, params['bn_exp']))
    hidden = params['w_dw'].shape[0]
    out = jax.lax.conv_general_dilated(
        out, params['w_dw'], window_strides=(stride, stride), padding=((1, 1), (1, 1)),
        dimension_numbers=('NCHW', 'OIHW', 'NCHW'),
        feature_group_count=hidden, precision=hp)
    out = silu(bn(out, params['bn_dw']))
    out = jax.lax.conv_general_dilated(
        out, params['w_red'], window_strides=(1, 1), padding=((0, 0), (0, 0)),
        dimension_numbers=('NCHW', 'OIHW', 'NCHW'), precision=hp)
    out = bn(out, params['bn_red'])

    C_in = x.shape[1]
    C_out = params['w_red'].shape[0]
    if stride == 1 and C_in == C_out and skip_connection:
        out = x + out
    return out


# ----------------------------- main -----------------------------

if __name__ == "__main__":
    # in=out=32 channels, expand_ratio=4 -> hidden=128 (lane-dense), stride=1
    # -> residual path is exercised.
    N, C_in, H, W = 2, 32, 16, 16
    C_out, stride, expand_ratio = 32, 1, 4

    key = jax.random.PRNGKey(0)
    kx, kp = jax.random.split(key)
    x = jax.random.normal(kx, (N, C_in, H, W), jnp.float32)
    params = init_params(kp, C_in, C_out, expand_ratio)

    out = inverted_residual_forward(x, params, stride=stride,
                                    expand_ratio=expand_ratio,
                                    skip_connection=True)
    out = jax.block_until_ready(out)

    ref = reference_forward(x, params, stride=stride,
                            expand_ratio=expand_ratio, skip_connection=True)
    assert out.shape == (N, C_out, H, W)
    assert jnp.allclose(out, ref, atol=2e-3, rtol=2e-3), \
        f"max abs diff {jnp.max(jnp.abs(out - ref))}"

    print("KERNEL_OK")
</pallas_src>

<mosaic_0001>
module attributes {stable_mosaic.version = 11 : i64} {
  func.func @inverted_residual_kernel(%arg0: i32, %arg1: memref<1x16x16x32xf32, #tpu.memory_space<vmem>>, %arg2: memref<32x128xf32, #tpu.memory_space<vmem>>, %arg3: memref<1x128xf32, #tpu.memory_space<vmem>>, %arg4: memref<1x128xf32, #tpu.memory_space<vmem>>, %arg5: memref<3x3x128xf32, #tpu.memory_space<vmem>>, %arg6: memref<1x128xf32, #tpu.memory_space<vmem>>, %arg7: memref<1x128xf32, #tpu.memory_space<vmem>>, %arg8: memref<128x32xf32, #tpu.memory_space<vmem>>, %arg9: memref<1x32xf32, #tpu.memory_space<vmem>>, %arg10: memref<1x32xf32, #tpu.memory_space<vmem>>, %arg11: memref<1x16x16x32xf32, #tpu.memory_space<vmem>>, %arg12: memref<18x18x128xf32, #tpu.memory_space<vmem>>) attributes {dimension_semantics = [#tpu.dimension_semantics<parallel>], iteration_bounds = array<i64: 2>, scalar_prefetch = 0 : i64, scratch_operands = 1 : i64, tpu.core_type = #tpu.core_type<tc>, window_params = [{transform_indices = @transform_0, window_bounds = array<i64: 1, 16, 16, 32>}, {pipeline_mode = #tpu.pipeline_mode<synchronous>, transform_indices = @transform_1, window_bounds = array<i64: 32, 128>}, {pipeline_mode = #tpu.pipeline_mode<synchronous>, transform_indices = @transform_2, window_bounds = array<i64: 1, 128>}, {pipeline_mode = #tpu.pipeline_mode<synchronous>, transform_indices = @transform_3, window_bounds = array<i64: 1, 128>}, {pipeline_mode = #tpu.pipeline_mode<synchronous>, transform_indices = @transform_4, window_bounds = array<i64: 3, 3, 128>}, {pipeline_mode = #tpu.pipeline_mode<synchronous>, transform_indices = @transform_5, window_bounds = array<i64: 1, 128>}, {pipeline_mode = #tpu.pipeline_mode<synchronous>, transform_indices = @transform_6, window_bounds = array<i64: 1, 128>}, {pipeline_mode = #tpu.pipeline_mode<synchronous>, transform_indices = @transform_7, window_bounds = array<i64: 128, 32>}, {pipeline_mode = #tpu.pipeline_mode<synchronous>, transform_indices = @transform_8, window_bounds = array<i64: 1, 32>}, {pipeline_mode = #tpu.pipeline_mode<synchronous>, transform_indices = @transform_9, window_bounds = array<i64: 1, 32>}, {transform_indices = @transform_10, window_bounds = array<i64: 1, 16, 16, 32>}]} {
    %c0 = arith.constant 0 : index
    %c0_0 = arith.constant 0 : index
    %c0_1 = arith.constant 0 : index
    %c0_2 = arith.constant 0 : index
    %0 = vector.load %arg1[%c0, %c0_0, %c0_1, %c0_2] : memref<1x16x16x32xf32, #tpu.memory_space<vmem>>, vector<1x16x16x32xf32>
    %1 = vector.shape_cast %0 : vector<1x16x16x32xf32> to vector<16x16x32xf32>
    %2 = vector.shape_cast %1 : vector<16x16x32xf32> to vector<256x32xf32>
    %c0_3 = arith.constant 0 : index
    %c0_4 = arith.constant 0 : index
    %3 = vector.load %arg2[%c0_3, %c0_4] : memref<32x128xf32, #tpu.memory_space<vmem>>, vector<32x128xf32>
    %cst = arith.constant dense<0.000000e+00> : vector<256x128xf32>
    %4 = tpu.matmul %2, %3, %cst {dimension_numbers = #tpu.dot_dimension_numbers<[1], [0], [0], [1], [0, 0, 1, 1], [], []>} : vector<256x32xf32>, vector<32x128xf32>, vector<256x128xf32> -> vector<256x128xf32>
    %c0_5 = arith.constant 0 : index
    %c0_6 = arith.constant 0 : index
    %5 = vector.load %arg3[%c0_5, %c0_6] : memref<1x128xf32, #tpu.memory_space<vmem>>, vector<1x128xf32>
    %6 = vector.broadcast %5 : vector<1x128xf32> to vector<256x128xf32>
    %7 = arith.mulf %4, %6 : vector<256x128xf32>
    %c0_7 = arith.constant 0 : index
    %c0_8 = arith.constant 0 : index
    %8 = vector.load %arg4[%c0_7, %c0_8] : memref<1x128xf32, #tpu.memory_space<vmem>>, vector<1x128xf32>
    %9 = vector.broadcast %8 : vector<1x128xf32> to vector<256x128xf32>
    %10 = arith.addf %7, %9 : vector<256x128xf32>
    %11 = arith.negf %10 : vector<256x128xf32>
    %12 = math.exp %11 : vector<256x128xf32>
    %cst_9 = arith.constant 1.000000e+00 : f32
    %13 = vector.broadcast %cst_9 : f32 to vector<256x128xf32>
    %14 = arith.addf %13, %12 : vector<256x128xf32>
    %15 = arith.divf %13, %14 : vector<256x128xf32>
    %16 = arith.mulf %10, %15 : vector<256x128xf32>
    %cst_10 = arith.constant 0.000000e+00 : f32
    %17 = vector.broadcast %cst_10 : f32 to vector<18x18x128xf32>
    %c0_11 = arith.constant 0 : index
    %c0_12 = arith.constant 0 : index
    %c0_13 = arith.constant 0 : index
    %18 = vector.load %arg12[%c0_11, %c0_12, %c0_13] : memref<18x18x128xf32, #tpu.memory_space<vmem>>, vector<18x18x128xf32>
    tpu.vector_store %arg12[%c0_11, %c0_12, %c0_13], %17 {strides = array<i32>} : memref<18x18x128xf32, #tpu.memory_space<vmem>>, vector<18x18x128xf32>,
    %19 = vector.shape_cast %16 : vector<256x128xf32> to vector<16x16x128xf32>
    %c1 = arith.constant 1 : index
    %c1_14 = arith.constant 1 : index
    %c0_15 = arith.constant 0 : index
    %20 = vector.load %arg12[%c1, %c1_14, %c0_15] : memref<18x18x128xf32, #tpu.memory_space<vmem>>, vector<16x16x128xf32>
    tpu.vector_store %arg12[%c1, %c1_14, %c0_15], %19 {strides = array<i32>} : memref<18x18x128xf32, #tpu.memory_space<vmem>>, vector<16x16x128xf32>,
    %cst_16 = arith.constant 0.000000e+00 : f32
    %21 = vector.broadcast %cst_16 : f32 to vector<16x16x128xf32>
    %c0_17 = arith.constant 0 : index
    %c0_18 = arith.constant 0 : index
    %c0_19 = arith.constant 0 : index
    %22 = vector.load %arg5[%c0_17, %c0_18, %c0_19] : memref<3x3x128xf32, #tpu.memory_space<vmem>>, vector<1x1x128xf32>
    %c0_20 = arith.constant 0 : index
    %c0_21 = arith.constant 0 : index
    %c0_22 = arith.constant 0 : index
    %23 = vector.load %arg12[%c0_20, %c0_21, %c0_22] : memref<18x18x128xf32, #tpu.memory_space<vmem>>, vector<16x16x128xf32>
    %24 = vector.broadcast %22 : vector<1x1x128xf32> to vector<16x16x128xf32>
    %25 = arith.mulf %23, %24 : vector<16x16x128xf32>
    %26 = arith.addf %21, %25 : vector<16x16x128xf32>
    %c0_23 = arith.constant 0 : index
    %c1_24 = arith.constant 1 : index
    %c0_25 = arith.constant 0 : index
    %27 = vector.load %arg5[%c0_23, %c1_24, %c0_25] : memref<3x3x128xf32, #tpu.memory_space<vmem>>, vector<1x1x128xf32>
    %c0_26 = arith.constant 0 : index
    %c1_27 = arith.constant 1 : index
    %c0_28 = arith.constant 0 : index
    %28 = vector.load %arg12[%c0_26, %c1_27, %c0_28] : memref<18x18x128xf32, #tpu.memory_space<vmem>>, vector<16x16x128xf32>
    %29 = vector.broadcast %27 : vector<1x1x128xf32> to vector<16x16x128xf32>
    %30 = arith.mulf %28, %29 : vector<16x16x128xf32>
    %31 = arith.addf %26, %30 : vector<16x16x128xf32>
    %c0_29 = arith.constant 0 : index
    %c2 = arith.constant 2 : index
    %c0_30 = arith.constant 0 : index
    %32 = vector.load %arg5[%c0_29, %c2, %c0_30] : memref<3x3x128xf32, #tpu.memory_space<vmem>>, vector<1x1x128xf32>
    %c0_31 = arith.constant 0 : index
    %c2_32 = arith.constant 2 : index
    %c0_33 = arith.constant 0 : index
    %33 = vector.load %arg12[%c0_31, %c2_32, %c0_33] : memref<18x18x128xf32, #tpu.memory_space<vmem>>, vector<16x16x128xf32>
    %34 = vector.broadcast %32 : vector<1x1x128xf32> to vector<16x16x128xf32>
    %35 = arith.mulf %33, %34 : vector<16x16x128xf32>
    %36 = arith.addf %31, %35 : vector<16x16x128xf32>
    %c1_34 = arith.constant 1 : index
    %c0_35 = arith.constant 0 : index
    %c0_36 = arith.constant 0 : index
    %37 = vector.load %arg5[%c1_34, %c0_35, %c0_36] : memref<3x3x128xf32, #tpu.memory_space<vmem>>, vector<1x1x128xf32>
    %c1_37 = arith.constant 1 : index
    %c0_38 = arith.constant 0 : index
    %c0_39 = arith.constant 0 : index
    %38 = vector.load %arg12[%c1_37, %c0_38, %c0_39] : memref<18x18x128xf32, #tpu.memory_space<vmem>>, vector<16x16x128xf32>
    %39 = vector.broadcast %37 : vector<1x1x128xf32> to vector<16x16x128xf32>
    %40 = arith.mulf %38, %39 : vector<16x16x128xf32>
    %41 = arith.addf %36, %40 : vector<16x16x128xf32>
    %c1_40 = arith.constant 1 : index
    %c1_41 = arith.constant 1 : index
    %c0_42 = arith.constant 0 : index
    %42 = vector.load %arg5[%c1_40, %c1_41, %c0_42] : memref<3x3x128xf32, #tpu.memory_space<vmem>>, vector<1x1x128xf32>
    %c1_43 = arith.constant 1 : index
    %c1_44 = arith.constant 1 : index
    %c0_45 = arith.constant 0 : index
    %43 = vector.load %arg12[%c1_43, %c1_44, %c0_45] : memref<18x18x128xf32, #tpu.memory_space<vmem>>, vector<16x16x128xf32>
    %44 = vector.broadcast %42 : vector<1x1x128xf32> to vector<16x16x128xf32>
    %45 = arith.mulf %43, %44 : vector<16x16x128xf32>
    %46 = arith.addf %41, %45 : vector<16x16x128xf32>
    %c1_46 = arith.constant 1 : index
    %c2_47 = arith.constant 2 : index
    %c0_48 = arith.constant 0 : index
    %47 = vector.load %arg5[%c1_46, %c2_47, %c0_48] : memref<3x3x128xf32, #tpu.memory_space<vmem>>, vector<1x1x128xf32>
    %c1_49 = arith.constant 1 : index
    %c2_50 = arith.constant 2 : index
    %c0_51 = arith.constant 0 : index
    %48 = vector.load %arg12[%c1_49, %c2_50, %c0_51] : memref<18x18x128xf32, #tpu.memory_space<vmem>>, vector<16x16x128xf32>
    %49 = vector.broadcast %47 : vector<1x1x128xf32> to vector<16x16x128xf32>
    %50 = arith.mulf %48, %49 : vector<16x16x128xf32>
    %51 = arith.addf %46, %50 : vector<16x16x128xf32>
    %c2_52 = arith.constant 2 : index
    %c0_53 = arith.constant 0 : index
    %c0_54 = arith.constant 0 : index
    %52 = vector.load %arg5[%c2_52, %c0_53, %c0_54] : memref<3x3x128xf32, #tpu.memory_space<vmem>>, vector<1x1x128xf32>
    %c2_55 = arith.constant 2 : index
    %c0_56 = arith.constant 0 : index
    %c0_57 = arith.constant 0 : index
    %53 = vector.load %arg12[%c2_55, %c0_56, %c0_57] : memref<18x18x128xf32, #tpu.memory_space<vmem>>, vector<16x16x128xf32>
    %54 = vector.broadcast %52 : vector<1x1x128xf32> to vector<16x16x128xf32>
    %55 = arith.mulf %53, %54 : vector<16x16x128xf32>
    %56 = arith.addf %51, %55 : vector<16x16x128xf32>
    %c2_58 = arith.constant 2 : index
    %c1_59 = arith.constant 1 : index
    %c0_60 = arith.constant 0 : index
    %57 = vector.load %arg5[%c2_58, %c1_59, %c0_60] : memref<3x3x128xf32, #tpu.memory_space<vmem>>, vector<1x1x128xf32>
    %c2_61 = arith.constant 2 : index
    %c1_62 = arith.constant 1 : index
    %c0_63 = arith.constant 0 : index
    %58 = vector.load %arg12[%c2_61, %c1_62, %c0_63] : memref<18x18x128xf32, #tpu.memory_space<vmem>>, vector<16x16x128xf32>
    %59 = vector.broadcast %57 : vector<1x1x128xf32> to vector<16x16x128xf32>
    %60 = arith.mulf %58, %59 : vector<16x16x128xf32>
    %61 = arith.addf %56, %60 : vector<16x16x128xf32>
    %c2_64 = arith.constant 2 : index
    %c2_65 = arith.constant 2 : index
    %c0_66 = arith.constant 0 : index
    %62 = vector.load %arg5[%c2_64, %c2_65, %c0_66] : memref<3x3x128xf32, #tpu.memory_space<vmem>>, vector<1x1x128xf32>
    %c2_67 = arith.constant 2 : index
    %c2_68 = arith.constant 2 : index
    %c0_69 = arith.constant 0 : index
    %63 = vector.load %arg12[%c2_67, %c2_68, %c0_69] : memref<18x18x128xf32, #tpu.memory_space<vmem>>, vector<16x16x128xf32>
    %64 = vector.broadcast %62 : vector<1x1x128xf32> to vector<16x16x128xf32>
    %65 = arith.mulf %63, %64 : vector<16x16x128xf32>
    %66 = arith.addf %61, %65 : vector<16x16x128xf32>
    %67 = vector.shape_cast %66 : vector<16x16x128xf32> to vector<256x128xf32>
    %c0_70 = arith.constant 0 : index
    %c0_71 = arith.constant 0 : index
    %68 = vector.load %arg6[%c0_70, %c0_71] : memref<1x128xf32, #tpu.memory_space<vmem>>, vector<1x128xf32>
    %69 = vector.broadcast %68 : vector<1x128xf32> to vector<256x128xf32>
    %70 = arith.mulf %67, %69 : vector<256x128xf32>
    %c0_72 = arith.constant 0 : index
    %c0_73 = arith.constant 0 : index
    %71 = vector.load %arg7[%c0_72, %c0_73] : memref<1x128xf32, #tpu.memory_space<vmem>>, vector<1x128xf32>
    %72 = vector.broadcast %71 : vector<1x128xf32> to vector<256x128xf32>
    %73 = arith.addf %70, %72 : vector<256x128xf32>
    %74 = arith.negf %73 : vector<256x128xf32>
    %75 = math.exp %74 : vector<256x128xf32>
    %cst_74 = arith.constant 1.000000e+00 : f32
    %76 = vector.broadcast %cst_74 : f32 to vector<256x128xf32>
    %77 = arith.addf %76, %75 : vector<256x128xf32>
    %78 = arith.divf %76, %77 : vector<256x128xf32>
    %79 = arith.mulf %73, %78 : vector<256x128xf32>
    %c0_75 = arith.constant 0 : index
    %c0_76 = arith.constant 0 : index
    %80 = vector.load %arg8[%c0_75, %c0_76] : memref<128x32xf32, #tpu.memory_space<vmem>>, vector<128x32xf32>
    %cst_77 = arith.constant dense<0.000000e+00> : vector<256x32xf32>
    %81 = tpu.matmul %79, %80, %cst_77 {dimension_numbers = #tpu.dot_dimension_numbers<[1], [0], [0], [1], [0, 0, 1, 1], [], []>} : vector<256x128xf32>, vector<128x32xf32>, vector<256x32xf32> -> vector<256x32xf32>
    %c0_78 = arith.constant 0 : index
    %c0_79 = arith.constant 0 : index
    %82 = vector.load %arg9[%c0_78, %c0_79] : memref<1x32xf32, #tpu.memory_space<vmem>>, vector<1x32xf32>
    %83 = vector.broadcast %82 : vector<1x32xf32> to vector<256x32xf32>
    %84 = arith.mulf %81, %83 : vector<256x32xf32>
    %c0_80 = arith.constant 0 : index
    %c0_81 = arith.constant 0 : index
    %85 = vector.load %arg10[%c0_80, %c0_81] : memref<1x32xf32, #tpu.memory_space<vmem>>, vector<1x32xf32>
    %86 = vector.broadcast %85 : vector<1x32xf32> to vector<256x32xf32>
    %87 = arith.addf %84, %86 : vector<256x32xf32>
    %88 = arith.addf %87, %2 : vector<256x32xf32>
    %89 = vector.shape_cast %88 : vector<256x32xf32> to vector<16x16x32xf32>
    %c0_82 = arith.constant 0 : index
    %c0_83 = arith.constant 0 : index
    %c0_84 = arith.constant 0 : index
    %c0_85 = arith.constant 0 : index
    %90 = vector.load %arg11[%c0_82, %c0_83, %c0_84, %c0_85] : memref<1x16x16x32xf32, #tpu.memory_space<vmem>>, vector<1x16x16x32xf32>
    %91 = vector.shape_cast %90 : vector<1x16x16x32xf32> to vector<16x16x32xf32>
    %92 = vector.shape_cast %89 : vector<16x16x32xf32> to vector<1x16x16x32xf32>
    tpu.vector_store %arg11[%c0_82, %c0_83, %c0_84, %c0_85], %92 {strides = array<i32>} : memref<1x16x16x32xf32, #tpu.memory_space<vmem>>, vector<1x16x16x32xf32>,
    return
  }
  func.func @transform_0(%arg0: i32) -> (i32, i32, i32, i32) {
    %c0_i32 = arith.constant 0 : i32
    %c0_i32_0 = arith.constant 0 : i32
    %c0_i32_1 = arith.constant 0 : i32
    %c0_i32_2 = arith.constant 0 : i32
    return %arg0, %c0_i32, %c0_i32_0, %c0_i32_1 : i32, i32, i32, i32
  }
  func.func @transform_1(%arg0: i32) -> (i32, i32) {
    %c0_i32 = arith.constant 0 : i32
    %c0_i32_0 = arith.constant 0 : i32
    %c0_i32_1 = arith.constant 0 : i32
    return %c0_i32, %c0_i32_0 : i32, i32
  }
  func.func @transform_2(%arg0: i32) -> (i32, i32) {
    %c0_i32 = arith.constant 0 : i32
    %c0_i32_0 = arith.constant 0 : i32
    %c0_i32_1 = arith.constant 0 : i32
    return %c0_i32, %c0_i32_0 : i32, i32
  }
  func.func @transform_3(%arg0: i32) -> (i32, i32) {
    %c0_i32 = arith.constant 0 : i32
    %c0_i32_0 = arith.constant 0 : i32
    %c0_i32_1 = arith.constant 0 : i32
    return %c0_i32, %c0_i32_0 : i32, i32
  }
  func.func @transform_4(%arg0: i32) -> (i32, i32, i32) {
    %c0_i32 = arith.constant 0 : i32
    %c0_i32_0 = arith.constant 0 : i32
    %c0_i32_1 = arith.constant 0 : i32
    %c0_i32_2 = arith.constant 0 : i32
    return %c0_i32, %c0_i32_0, %c0_i32_1 : i32, i32, i32
  }
  func.func @transform_5(%arg0: i32) -> (i32, i32) {
    %c0_i32 = arith.constant 0 : i32
    %c0_i32_0 = arith.constant 0 : i32
    %c0_i32_1 = arith.constant 0 : i32
    return %c0_i32, %c0_i32_0 : i32, i32
  }
  func.func @transform_6(%arg0: i32) -> (i32, i32) {
    %c0_i32 = arith.constant 0 : i32
    %c0_i32_0 = arith.constant 0 : i32
    %c0_i32_1 = arith.constant 0 : i32
    return %c0_i32, %c0_i32_0 : i32, i32
  }
  func.func @transform_7(%arg0: i32) -> (i32, i32) {
    %c0_i32 = arith.constant 0 : i32
    %c0_i32_0 = arith.constant 0 : i32
    %c0_i32_1 = arith.constant 0 : i32
    return %c0_i32, %c0_i32_0 : i32, i32
  }
  func.func @transform_8(%arg0: i32) -> (i32, i32) {
    %c0_i32 = arith.constant 0 : i32
    %c0_i32_0 = arith.constant 0 : i32
    %c0_i32_1 = arith.constant 0 : i32
    return %c0_i32, %c0_i32_0 : i32, i32
  }
  func.func @transform_9(%arg0: i32) -> (i32, i32) {
    %c0_i32 = arith.constant 0 : i32
    %c0_i32_0 = arith.constant 0 : i32
    %c0_i32_1 = arith.constant 0 : i32
    return %c0_i32, %c0_i32_0 : i32, i32
  }
  func.func @transform_10(%arg0: i32) -> (i32, i32, i32, i32) {
    %c0_i32 = arith.constant 0 : i32
    %c0_i32_0 = arith.constant 0 : i32
    %c0_i32_1 = arith.constant 0 : i32
    %c0_i32_2 = arith.constant 0 : i32
    return %arg0, %c0_i32, %c0_i32_0, %c0_i32_1 : i32, i32, i32, i32
  }
}

</mosaic_0001>

<bundles_post_ra>
// kernel: tpu_custom_call.1
= control target key start
LH: loop header
LB: loop body
LE: loop exit
PB: predicated region body
PF: predicated region fallthrough
CT: control target
= control target key end

     0   :  { %15 = vsyncpa [#allocation4], 0  ;;  %s5418_s0 = inlined_call_operand.hbm [shape: f32[2,16,16,32], index: 0, kind: input, shape index: {}]   ;;  %s5419_s1 = inlined_call_operand.vmem [shape: f32[32,128], index: 1, kind: input, shape index: {}]   ;;  %s5420_s2 = inlined_call_operand.vmem [shape: f32[1,128], index: 2, kind: input, shape index: {}]   ;;  %s5421_s3 = inlined_call_operand.vmem [shape: f32[1,128], index: 3, kind: input, shape index: {}]   ;;  %s5422_s4 = inlined_call_operand.vmem [shape: f32[3,3,128], index: 4, kind: input, shape index: {}]   ;;  %s5423_s5 = inlined_call_operand.vmem [shape: f32[1,128], index: 5, kind: input, shape index: {}]   ;;  %s5424_s6 = inlined_call_operand.vmem [shape: f32[1,128], index: 6, kind: input, shape index: {}]   ;;  %s5425_s7 = inlined_call_operand.vmem [shape: f32[128,32], index: 7, kind: input, shape index: {}]   ;;  %s5426_s8 = inlined_call_operand.vmem [shape: f32[1,32], index: 8, kind: input, shape index: {}]   ;;  %s5427_s9 = inlined_call_operand.vmem [shape: f32[1,32], index: 9, kind: input, shape index: {}]   ;;  %s5428_s10 = inlined_call_operand.hbm [shape: f32[2,16,16,32], index: 10, kind: output, shape index: {}]  }
   0x1   :  { %17 = vsyncpa [#allocation4 + $0x1], 0 }
   0x2   :  { %18 = vsyncpa [#allocation5], 0 }
   0x3   :  { %20 = vsyncpa [#allocation5 + $0x1], 0  ;;  %s3707_s13 = smov 0   ;;  %s3709_s14 = smov 0  }
   0x4   :  { %s3711_s15 = smov 0   ;;  %s3713_s16 = smov 0  }
   0x5 LB: > { %5434 = sst [smem:[#allocation9_spill]] %s3639_s15  ;;  %s3728_s17 = sadd.s32 4294967295, %s3643_s16   ;;  %s3643_s16 = sphi %s3713_s16, %s5446_s16   ;;  %s3639_s15 = sphi %s3711_s15, %s5448_s15   ;;  %s3635_s14 = sphi %s3709_s14, %s5450_s14   ;;  %s3631_s13 = sphi %s3707_s13, %s5449_s13  }
   0x6   : > { %s2809_s18 = sadd.s32 4294967294, %s3643_s16   ;;  %s3732_s19 = sadd.s32 1, %s3643_s16  }
   0x7   : > { %5435 = sst [smem:[#allocation10_spill]] %s3732_s19  ;;  %s33_s20 = sadd.s32 1, %s3639_s15 }
   0x8   : > { %s30_s21 = ssub.s32 %s3643_s16, %s3732_s19  ;;  %p40_p0 = scmp.ne.s32.totalorder %s3639_s15, %s3635_s14 }
   0x9   : > { %p31_p1 = scmp.eq.s32.totalorder %s30_s21, 0  ;;  %p41_p2 = scmp.eq.s32.totalorder %s3643_s16, 0 }
   0xa   : > { %p46_p3 = scmp.ne.s32.totalorder %s3635_s14, %s3631_s13  ;;  %p47_p4 = scmp.eq.s32.totalorder %s3728_s17, 0 }
   0xb   : > { %s3744_s22 = scalar_select %p31_p1, %s3639_s15, %s33_s20  }
   0xc   : > { %p3746_p5 = por %p41_p2, %p40_p0  ;;  %p3750_p6 = por %p47_p4, %p46_p3 }
   0xd   : > { %5436 = sst [smem:[#allocation11_spill]] %s3744_s22  ;;  %p259_p7 = scmp.eq.s32.totalorder %s3728_s17, 1 }
   0xe   : > { %s5438_s24 = scalar_select %p3750_p6, 1, 0 }
   0xf   : > { %p265_p8 = scmp.eq.s32.totalorder %s2809_s18, 1  ;;  %p3206_p10 = scmp.lt.s32.totalorder %s3643_s16, 2 }
  0x10   : > { %p3757_p11 = por %p259_p7, %p40_p0  ;;  %s312_s27 = sand.u32 1, %s3639_s15  }
  0x11   : > { %p3761_p12 = por %p265_p8, %p46_p3  ;;  %s2940_s28 = sshll.u32 %s3643_s16, 12 }
  0x12   : > { %s5439_s25 = scalar_select %p3757_p11, 1, 0 }
  0x13   : > { %s5440_s26 = scalar_select %p3761_p12, 1, 0 }
  0x14   : > { %s2812_s29 = sshll.u32 %s312_s27, 8  ;;  %s3770_s12 = scalar_lea.hbm %s5418_s0, %s2940_s28 }
  0x15   : > { %s316_s18 = scalar_lea.vmem [#allocation3], %s2812_s29  ;;  %p3774_p13 = pnand %p3206_p10, %p3746_p5 }
  0x16   : > { %s323_s20 = sshll.u32 %s316_s18, 4  ;;  %s3780_s22 = scalar_lea.sflag [#allocation4], %s312_s27  ;;  %s3778_s20 = int_to_ptr.vmem [resolvable:$true] %s323_s20 }
  0x17   : > { %s3551_s15 = scalar_lea.hbm %s3770_s12, 4096  ;;  %p3553_p1 = pneg %p3774_p13 }
  0x18   : > { %p3552_p0 = scmp.ne.s32.totalorder %s3770_s12, %s3551_s15  ;;  %s3556_s29 = scalar_lea.hbm %s5418_s0, 8192 }
  0x19   : > { %p3557_p4 = scmp.lt.s32.totalorder %s3770_s12, %s5418_s0  ;;  %p3558_p5 = scmp.lt.s32.totalorder %s3556_s29, %s3551_s15 }
  0x1a   : > { %p3554_p2 = pnand %p3553_p1, %p3552_p0 }
  0x1b   : > { %p3559_p7 = por %p3558_p5, %p3557_p4 }
  0x1c   : > { %p3555_p3 = pneg %p3554_p2 }
  0x1e   : > { %p3560_p8 = pnand %p3559_p7, %p3555_p3 }
  0x20   : > { %3563 = shalt.err (!%p3560_p8)
}
  0x21   : > { %s3564_s27 = scalar_lea.vmem %s3778_s20, 4096  ;;  %s3645_s18 = smov [#allocation3]  }
  0x22   : > { %p3565_p10 = scmp.ne.s32.totalorder %s3778_s20, %s3564_s27  ;;  %s3569_s19 = sshll.u32 %s3645_s18, 4  ;;  %s3570_s19 = int_to_ptr.vmem [resolvable:$false] %s3569_s19 }
  0x23   : > { %s3571_s28 = scalar_lea.vmem %s3570_s19, 8192  ;;  %p3572_p2 = scmp.lt.s32.totalorder %s3778_s20, %s3570_s19 }
  0x24   : > { %p3567_p9 = pnand %p3565_p10, %p3553_p1  ;;  %p3573_p12 = scmp.lt.s32.totalorder %s3571_s28, %s3564_s27 }
  0x26   : > { %p3568_p0 = pneg %p3567_p9  ;;  %p3574_p11 = por %p3573_p12, %p3572_p2 }
  0x28   : > { %p3575_p6 = pnand %p3574_p11, %p3568_p0 }
  0x2a   : > { %3578 = shalt.err (!%p3575_p6)
}
  0x2b   : > { %s3646_s15 = smov 128   ;;  %s3647_s30 = smov 8  }
  0x2c   : > { %3201 = dma.hbm_to_vmem [thread:$0]  (!%p3774_p13), %s3770_s12, 4096, %s3778_s20, %s3780_s22, %s3646_s15, %s3646_s15, %s3647_s30  }
  0x2d   : > { %p2815_p9 = scmp.ge.s32.totalorder %s3643_s16, 1  ;;  %p331_p1 = scmp.lt.s32.totalorder %s3643_s16, 3 }
  0x2f   : > { %p332_p3 = pnand %p2815_p9, %p331_p1 }
  0x30   : > { %s3804_s19 = sand.u32 (!%p332_p3), 1, %s3635_s14   ;;  %p5442_p6 = scmp.ne.s32.totalorder (!%p332_p3), %s5438_s24, 0 }
  0x31   : > { %335 = sbr.rel (%p332_p3) target bundleno = 773 (0x305), region = 60  ;;  %s2816_s29 = sshll.u32 (!%p332_p3), %s3804_s19, 8 }
  0x32   : > { %s338_s23 = scalar_lea.sflag (!%p332_p3), [#allocation4], %s3804_s19  ;;  %s3810_s11 = scalar_lea.vmem (!%p332_p3), [#allocation3], %s2816_s29 }
  0x36   : > { %3622 = dma.done.wait (%p5442_p6), %s338_s23, 4096  }
  0x37   : > { %3624 = vsyncadd (%p5442_p6), %s338_s23, 4294963200  ;;  %vm414_vm0 = vcmask 261120   ;;  %v413_v0 = vld [vmem:[%s5419_s1 + $0x18] sm:$0xff]  ;;  %v412_v1 = vld [vmem:[%s5419_s1 + $0x10] sm:$0xff]  ;;  %v3648_v36 = vmov 0.0   ;;  %s5211_s24 = scalar_lea.vmem [#allocation6], %s2816_s29 }
  0x38   : > { %3026 = vmatprep.subr.mxu0 %v413_v0  ;;  %v378_v2 = vld [vmem:[%s3810_s11] sm:$0xff]  ;;  %v411_v3 = vld [vmem:[%s5419_s1 + $0x8] sm:$0xff]  ;;  %v410_v4 = vld [vmem:[%s5419_s1] sm:$0xff]  ;;  %1042 = vst [vmem:[#allocation2 + $0x20] sm:$0xff] %v3648_v36  ;;  %s2941_s29 = sshll.u32 %s3728_s17, 12  ;;  %s2736_s18 = sshll.u32 %s5211_s24, 4  ;;  %s5370_s18 = int_to_ptr.vmem [resolvable:$true] %s2736_s18 }
  0x39   : > { %3027 = vmatpush3.msra.mxu0 %v413_v0  ;;  %3034 = vmatprep.mubr.msk.f32.mxu0 %vm414_vm0, %v378_v2  ;;  %v379_v5 = vld [vmem:[%s3810_s11 + $0x8] sm:$0xff]  ;;  %v380_v6 = vld [vmem:[%s3810_s11 + $0x10] sm:$0xff]  ;;  %v381_v7 = vld [vmem:[%s3810_s11 + $0x18] sm:$0xff]  ;;  %1043 = vst [vmem:[#allocation2 + $0x28] sm:$0x3] %v3648_v36  ;;  %s5368_s30 = scalar_lea.hbm %s5428_s10, %s2941_s29  ;;  %s2723_s17 = scalar_lea.sflag [#allocation5], %s3804_s19 }
  0x3a   : > { %3028 = vmatprep.subr.mxu0 %v412_v1  ;;  %v382_v8 = vld [vmem:[%s3810_s11 + $0x20] sm:$0xff]  ;;  %v383_v9 = vld [vmem:[%s3810_s11 + $0x28] sm:$0xff]  ;;  %v384_v10 = vld [vmem:[%s3810_s11 + $0x30] sm:$0xff]  ;;  %1038 = vst [vmem:[#allocation2] sm:$0xff] %v3648_v36  ;;  %s3579_s23 = scalar_lea.vmem %s5370_s18, 4096  ;;  %p5443_p12 = scmp.ne.s32.totalorder %s5439_s25, 0 }
  0x3b   : > { %3029 = vmatpush3.msra.mxu0 %v412_v1  ;;  %v385_v11 = vld [vmem:[%s3810_s11 + $0x38] sm:$0xff]  ;;  %v386_v12 = vld [vmem:[%s3810_s11 + $0x40] sm:$0xff]  ;;  %v387_v13 = vld [vmem:[%s3810_s11 + $0x48] sm:$0xff]  ;;  %1039 = vst [vmem:[#allocation2 + $0x8] sm:$0xff] %v3648_v36  ;;  %p3580_p11 = scmp.ne.s32.totalorder %s5370_s18, %s3579_s23  ;;  %s3649_s22 = smov [#allocation6]  }
  0x3c   : > { %3030 = vmatprep.subr.mxu0 %v411_v3  ;;  %v388_v14 = vld [vmem:[%s3810_s11 + $0x50] sm:$0xff]  ;;  %v389_v15 = vld [vmem:[%s3810_s11 + $0x58] sm:$0xff]  ;;  %v390_v16 = vld [vmem:[%s3810_s11 + $0x60] sm:$0xff]  ;;  %1040 = vst [vmem:[#allocation2 + $0x10] sm:$0x3] %v3648_v36  ;;  %s3583_s12 = sshll.u32 %s3649_s22, 4  ;;  %s3584_s12 = int_to_ptr.vmem [resolvable:$false] %s3583_s12 }
  0x3d   : > { %3031 = vmatpush3.msra.mxu0 %v411_v3  ;;  %v391_v17 = vld [vmem:[%s3810_s11 + $0x68] sm:$0xff]  ;;  %v392_v18 = vld [vmem:[%s3810_s11 + $0x70] sm:$0xff]  ;;  %v393_v19 = vld [vmem:[%s3810_s11 + $0x78] sm:$0xff]  ;;  %1041 = vst [vmem:[#allocation2 + $0x18] sm:$0xff] %v3648_v36  ;;  %p3581_p13 = pnand %p3580_p11, %p5443_p12  ;;  %s3585_s20 = scalar_lea.vmem %s3584_s12, 8192 }
  0x3e   : > { %3032 = vmatprep.subr.mxu0 %v410_v4  ;;  %v394_v20 = vld [vmem:[%s3810_s11 + $0x80] sm:$0xff]  ;;  %v395_v21 = vld [vmem:[%s3810_s11 + $0x88] sm:$0xff]  ;;  %v396_v22 = vld [vmem:[%s3810_s11 + $0x90] sm:$0xff]  ;;  %1044 = vst [vmem:[#allocation2 + $0x30] sm:$0xff] %v3648_v36  ;;  %p3586_p5 = scmp.lt.s32.totalorder %s5370_s18, %s3584_s12  ;;  %p3587_p7 = scmp.lt.s32.totalorder %s3585_s20, %s3579_s23 }
  0x3f   : > { %3033 = vmatpush3.msra.mxu0 %v410_v4  ;;  %v397_v23 = vld [vmem:[%s3810_s11 + $0x98] sm:$0xff]  ;;  %v398_v24 = vld [vmem:[%s3810_s11 + $0xa0] sm:$0xff]  ;;  %v399_v25 = vld [vmem:[%s3810_s11 + $0xa8] sm:$0xff]  ;;  %1045 = vst [vmem:[#allocation2 + $0x38] sm:$0xff] %v3648_v36  ;;  %p3582_p4 = pneg %p3581_p13 }
  0x40   : > { %3035 = vmatmul.mubr.msk.f32.vlgmr.msra.gmra.mxu0 %vm414_vm0, %v379_v5  ;;  %v400_v26 = vld [vmem:[%s3810_s11 + $0xb0] sm:$0xff]  ;;  %v401_v27 = vld [vmem:[%s3810_s11 + $0xb8] sm:$0xff]  ;;  %v402_v28 = vld [vmem:[%s3810_s11 + $0xc0] sm:$0xff]  ;;  %1046 = vst [vmem:[#allocation2 + $0x40] sm:$0x3] %v3648_v36  ;;  %p3588_p8 = por %p3587_p7, %p3586_p5 }
  0x41   : > { %3037 = vmatprep.mubr.msk.f32.mxu0 %vm414_vm0, %v380_v6  ;;  %v403_v29 = vld [vmem:[%s3810_s11 + $0xc8] sm:$0xff]  ;;  %v404_v30 = vld [vmem:[%s3810_s11 + $0xd0] sm:$0xff]  ;;  %v405_v31 = vld [vmem:[%s3810_s11 + $0xd8] sm:$0xff]  ;;  %1047 = vst [vmem:[#allocation2 + $0x48] sm:$0xff] %v3648_v36 }
  0x42   : > { %v406_v32 = vld [vmem:[%s3810_s11 + $0xe0] sm:$0xff]  ;;  %v407_v33 = vld [vmem:[%s3810_s11 + $0xe8] sm:$0xff]  ;;  %v408_v34 = vld [vmem:[%s3810_s11 + $0xf0] sm:$0xff]  ;;  %1048 = vst [vmem:[#allocation2 + $0x50] sm:$0xff] %v3648_v36  ;;  %p3589_p10 = pnand %p3588_p8, %p3582_p4 }
  0x43   : > { %v409_v35 = vld [vmem:[%s3810_s11 + $0xf8] sm:$0xff]  ;;  %1049 = vst [vmem:[#allocation2 + $0x58] sm:$0x3] %v3648_v36  ;;  %1050 = vst [vmem:[#allocation2 + $0x60] sm:$0xff] %v3648_v36  ;;  %v2354_v37 = vld [vmem:[%s5425_s7 + $0x78] sm:$0xff] }
  0x44   : > { %3038 = vmatmul.mubr.msk.f32.gmra.mxu0 %vm414_vm0, %v381_v7  ;;  %1051 = vst [vmem:[#allocation2 + $0x68] sm:$0xff] %v3648_v36  ;;  %1052 = vst [vmem:[#allocation2 + $0x70] sm:$0x3] %v3648_v36  ;;  %3082 = vmatprep.subr.mxu0 %v2354_v37  ;;  %v2353_v38 = vld [vmem:[%s5425_s7 + $0x70] sm:$0xff]  ;;  %v2352_v39 = vld [vmem:[%s5425_s7 + $0x68] sm:$0xff] }
  0x45   : > { %3040 = vmatprep.mubr.msk.f32.mxu0 %vm414_vm0, %v382_v8  ;;  %1053 = vst [vmem:[#allocation2 + $0x78] sm:$0xff] %v3648_v36  ;;  %1054 = vst [vmem:[#allocation2 + $0x80] sm:$0xff] %v3648_v36  ;;  %3162 = vmatprep.subr.mxu1 %v2354_v37  ;;  %v2351_v40 = vld [vmem:[%s5425_s7 + $0x60] sm:$0xff]  ;;  %v2350_v41 = vld [vmem:[%s5425_s7 + $0x58] sm:$0xff] }
  0x46   : > { %1055 = vst [vmem:[#allocation2 + $0x88] sm:$0x3] %v3648_v36  ;;  %1056 = vst [vmem:[#allocation2 + $0x90] sm:$0xff] %v3648_v36  ;;  %3083 = vmatpush3.msra.mxu0 %v2354_v37  ;;  %3178 = vmatpush3.msra.mxu1 %v2354_v37  ;;  %v2349_v42 = vld [vmem:[%s5425_s7 + $0x50] sm:$0xff]  ;;  %v2348_v43 = vld [vmem:[%s5425_s7 + $0x48] sm:$0xff] }
  0x47   : > { %1057 = vst [vmem:[#allocation2 + $0x98] sm:$0xff] %v3648_v36  ;;  %1058 = vst [vmem:[#allocation2 + $0xa0] sm:$0x3] %v3648_v36  ;;  %3084 = vmatprep.subr.mxu0 %v2353_v38  ;;  %3163 = vmatprep.subr.mxu1 %v2353_v38  ;;  %v2347_v44 = vld [vmem:[%s5425_s7 + $0x40] sm:$0xff]  ;;  %v2346_v45 = vld [vmem:[%s5425_s7 + $0x38] sm:$0xff] }
  0x48   : > { %3041 = vmatmul.mubr.msk.f32.gmra.mxu0 %vm414_vm0, %v383_v9  ;;  %1059 = vst [vmem:[#allocation2 + $0xa8] sm:$0xff] %v3648_v36  ;;  %1060 = vst [vmem:[#allocation2 + $0xb0] sm:$0xff] %v3648_v36  ;;  %3179 = vmatpush3.msra.mxu1 %v2353_v38  ;;  %v2345_v46 = vld [vmem:[%s5425_s7 + $0x30] sm:$0xff]  ;;  %v2344_v47 = vld [vmem:[%s5425_s7 + $0x28] sm:$0xff] }
  0x49   : > { %3043 = vmatprep.mubr.msk.f32.mxu0 %vm414_vm0, %v384_v10  ;;  %1061 = vst [vmem:[#allocation2 + $0xb8] sm:$0x3] %v3648_v36  ;;  %1062 = vst [vmem:[#allocation2 + $0xc0] sm:$0xff] %v3648_v36  ;;  %3085 = vmatpush3.msra.mxu0 %v2353_v38  ;;  %v2343_v48 = vld [vmem:[%s5425_s7 + $0x20] sm:$0xff]  ;;  %v2342_v49 = vld [vmem:[%s5425_s7 + $0x18] sm:$0xff] }
  0x4a   : > { %1063 = vst [vmem:[#allocation2 + $0xc8] sm:$0xff] %v3648_v36  ;;  %1064 = vst [vmem:[#allocation2 + $0xd0] sm:$0x3] %v3648_v36  ;;  %3086 = vmatprep.subr.mxu0 %v2352_v39  ;;  %3164 = vmatprep.subr.mxu1 %v2352_v39  ;;  %v2341_v50 = vld [vmem:[%s5425_s7 + $0x10] sm:$0xff]  ;;  %v2340_v51 = vld [vmem:[%s5425_s7 + $0x8] sm:$0xff] }
  0x4b   : > { %1065 = vst [vmem:[#allocation2 + $0xd8] sm:$0xff] %v3648_v36  ;;  %1066 = vst [vmem:[#allocation2 + $0xe0] sm:$0xff] %v3648_v36  ;;  %3087 = vmatpush3.msra.mxu0 %v2352_v39  ;;  %3180 = vmatpush3.msra.mxu1 %v2352_v39  ;;  %v2339_v52 = vld [vmem:[%s5425_s7] sm:$0xff] }
  0x4c   : > { %3044 = vmatmul.mubr.msk.f32.gmra.mxu0 %vm414_vm0, %v385_v11  ;;  %1067 = vst [vmem:[#allocation2 + $0xe8] sm:$0x3] %v3648_v36  ;;  %1068 = vst [vmem:[#allocation2 + $0xf0] sm:$0xff] %v3648_v36  ;;  %3088 = vmatprep.subr.mxu0 %v2351_v40  ;;  %v3943_v53 = vld [vmem:[%s5420_s2] ss:$0 sm:$0xff] }
  0x4d   : > { %3046 = vmatprep.mubr.msk.f32.mxu0 %vm414_vm0, %v386_v12  ;;  %1069 = vst [vmem:[#allocation2 + $0xf8] sm:$0xff] %v3648_v36  ;;  %1070 = vst [vmem:[#allocation2 + $0x100] sm:$0x3] %v3648_v36  ;;  %3165 = vmatprep.subr.mxu1 %v2351_v40  ;;  %v3948_v55 = vld [vmem:[%s5421_s3] ss:$0 sm:$0xff] }
  0x4e   : > { %1071 = vst [vmem:[#allocation2 + $0x108] sm:$0xff] %v3648_v36  ;;  %1072 = vst [vmem:[#allocation2 + $0x110] sm:$0xff] %v3648_v36  ;;  %3089 = vmatpush3.msra.mxu0 %v2351_v40  ;;  %3181 = vmatpush3.msra.mxu1 %v2351_v40 }
  0x4f   : > { %1073 = vst [vmem:[#allocation2 + $0x118] sm:$0x3] %v3648_v36  ;;  %1074 = vst [vmem:[#allocation2 + $0x120] sm:$0xff] %v3648_v36  ;;  %3090 = vmatprep.subr.mxu0 %v2350_v41  ;;  %3166 = vmatprep.subr.mxu1 %v2350_v41 }
  0x50   : > { %3047 = vmatmul.mubr.msk.f32.gmra.mxu0 %vm414_vm0, %v387_v13  ;;  %1075 = vst [vmem:[#allocation2 + $0x128] sm:$0xff] %v3648_v36  ;;  %1076 = vst [vmem:[#allocation2 + $0x130] sm:$0x3] %v3648_v36  ;;  %3182 = vmatpush3.msra.mxu1 %v2350_v41 }
  0x51   : > { %3049 = vmatprep.mubr.msk.f32.mxu0 %vm414_vm0, %v388_v14  ;;  %1077 = vst [vmem:[#allocation2 + $0x138] sm:$0xff] %v3648_v36  ;;  %1078 = vst [vmem:[#allocation2 + $0x140] sm:$0xff] %v3648_v36  ;;  %3091 = vmatpush3.msra.mxu0 %v2350_v41 }
  0x52   : > { %1079 = vst [vmem:[#allocation2 + $0x148] sm:$0x3] %v3648_v36  ;;  %1080 = vst [vmem:[#allocation2 + $0x150] sm:$0xff] %v3648_v36  ;;  %3092 = vmatprep.subr.mxu0 %v2349_v42  ;;  %3167 = vmatprep.subr.mxu1 %v2349_v42 }
  0x53   : > { %1081 = vst [vmem:[#allocation2 + $0x158] sm:$0xff] %v3648_v36  ;;  %1082 = vst [vmem:[#allocation2 + $0x160] sm:$0x3] %v3648_v36  ;;  %3093 = vmatpush3.msra.mxu0 %v2349_v42  ;;  %3183 = vmatpush3.msra.mxu1 %v2349_v42 }
  0x54   : > { %3050 = vmatmul.mubr.msk.f32.gmra.mxu0 %vm414_vm0, %v389_v15  ;;  %1083 = vst [vmem:[#allocation2 + $0x168] sm:$0xff] %v3648_v36  ;;  %1084 = vst [vmem:[#allocation2 + $0x170] sm:$0xff] %v3648_v36  ;;  %3094 = vmatprep.subr.mxu0 %v2348_v43 }
  0x55   : > { %3052 = vmatprep.mubr.msk.f32.mxu0 %vm414_vm0, %v390_v16  ;;  %1085 = vst [vmem:[#allocation2 + $0x178] sm:$0x3] %v3648_v36  ;;  %1086 = vst [vmem:[#allocation2 + $0x180] sm:$0xff] %v3648_v36  ;;  %3168 = vmatprep.subr.mxu1 %v2348_v43 }
  0x56   : > { %1087 = vst [vmem:[#allocation2 + $0x188] sm:$0xff] %v3648_v36  ;;  %1088 = vst [vmem:[#allocation2 + $0x190] sm:$0x3] %v3648_v36  ;;  %3095 = vmatpush3.msra.mxu0 %v2348_v43  ;;  %3184 = vmatpush3.msra.mxu1 %v2348_v43 }
  0x57   : > { %1089 = vst [vmem:[#allocation2 + $0x198] sm:$0xff] %v3648_v36  ;;  %1090 = vst [vmem:[#allocation2 + $0x1a0] sm:$0xff] %v3648_v36  ;;  %3096 = vmatprep.subr.mxu0 %v2347_v44  ;;  %3169 = vmatprep.subr.mxu1 %v2347_v44 }
  0x58   : > { %3053 = vmatmul.mubr.msk.f32.gmra.mxu0 %vm414_vm0, %v391_v17  ;;  %1091 = vst [vmem:[#allocation2 + $0x1a8] sm:$0x3] %v3648_v36  ;;  %3185 = vmatpush3.msra.mxu1 %v2347_v44 }
  0x59   : > { %3055 = vmatprep.mubr.msk.f32.mxu0 %vm414_vm0, %v392_v18  ;;  %3097 = vmatpush3.msra.mxu0 %v2347_v44 }
  0x5a   : > { %3098 = vmatprep.subr.mxu0 %v2346_v45  ;;  %3170 = vmatprep.subr.mxu1 %v2346_v45 }
  0x5b   : > { %3099 = vmatpush3.msra.mxu0 %v2346_v45  ;;  %3186 = vmatpush3.msra.mxu1 %v2346_v45 }
  0x5c   : > { %3056 = vmatmul.mubr.msk.f32.gmra.mxu0 %vm414_vm0, %v393_v19  ;;  %3100 = vmatprep.subr.mxu0 %v2345_v46 }
  0x5d   : > { %3058 = vmatprep.mubr.msk.f32.mxu0 %vm414_vm0, %v394_v20  ;;  %3171 = vmatprep.subr.mxu1 %v2345_v46 }
  0x5e   : > { %3101 = vmatpush3.msra.mxu0 %v2345_v46  ;;  %3187 = vmatpush3.msra.mxu1 %v2345_v46 }
  0x5f   : > { %3102 = vmatprep.subr.mxu0 %v2344_v47  ;;  %3172 = vmatprep.subr.mxu1 %v2344_v47 }
  0x60   : > { %3059 = vmatmul.mubr.msk.f32.gmra.mxu0 %vm414_vm0, %v395_v21  ;;  %3188 = vmatpush3.msra.mxu1 %v2344_v47 }
  0x61   : > { %3061 = vmatprep.mubr.msk.f32.mxu0 %vm414_vm0, %v396_v22  ;;  %3103 = vmatpush3.msra.mxu0 %v2344_v47 }
  0x62   : > { %3104 = vmatprep.subr.mxu0 %v2343_v48  ;;  %3173 = vmatprep.subr.mxu1 %v2343_v48 }
  0x63   : > { %3105 = vmatpush3.msra.mxu0 %v2343_v48  ;;  %3189 = vmatpush3.msra.mxu1 %v2343_v48 }
  0x64   : > { %3062 = vmatmul.mubr.msk.f32.gmra.mxu0 %vm414_vm0, %v397_v23  ;;  %3106 = vmatprep.subr.mxu0 %v2342_v49 }
  0x65   : > { %3064 = vmatprep.mubr.msk.f32.mxu0 %vm414_vm0, %v398_v24  ;;  %3174 = vmatprep.subr.mxu1 %v2342_v49 }
  0x66   : > { %3107 = vmatpush3.msra.mxu0 %v2342_v49  ;;  %3190 = vmatpush3.msra.mxu1 %v2342_v49 }
  0x67   : > { %3108 = vmatprep.subr.mxu0 %v2341_v50  ;;  %3175 = vmatprep.subr.mxu1 %v2341_v50 }
  0x68   : > { %3065 = vmatmul.mubr.msk.f32.gmra.mxu0 %vm414_vm0, %v399_v25  ;;  %3191 = vmatpush3.msra.mxu1 %v2341_v50 }
  0x69   : > { %3067 = vmatprep.mubr.msk.f32.mxu0 %vm414_vm0, %v400_v26  ;;  %3109 = vmatpush3.msra.mxu0 %v2341_v50 }
  0x6a   : > { %3110 = vmatprep.subr.mxu0 %v2340_v51  ;;  %3176 = vmatprep.subr.mxu1 %v2340_v51 }
  0x6b   : > { %3111 = vmatpush3.msra.mxu0 %v2340_v51  ;;  %3192 = vmatpush3.msra.mxu1 %v2340_v51  ;;  %v4017_v51 = vld [vmem:[%s5422_s4] ss:$0 sm:$0xff] }
  0x6c   : > { %3068 = vmatmul.mubr.msk.f32.gmra.mxu0 %vm414_vm0, %v401_v27  ;;  %3112 = vmatprep.subr.mxu0 %v2339_v52 }
  0x6d   : > { %3070 = vmatprep.mubr.msk.f32.mxu0 %vm414_vm0, %v402_v28  ;;  %3177 = vmatprep.subr.mxu1 %v2339_v52 }
  0x6e   : > { %3113 = vmatpush3.msra.mxu0 %v2339_v52  ;;  %3193 = vmatpush3.msra.mxu1 %v2339_v52  ;;  %v1227_v52 = vld [vmem:[#allocation2 + $0x1] sm:$0xff] }
  0x70   : > { %3071 = vmatmul.mubr.msk.f32.gmra.mxu0 %vm414_vm0, %v403_v29 }
  0x71   : > { %3073 = vmatprep.mubr.msk.f32.mxu0 %vm414_vm0, %v404_v30 }
  0x74   : > { %3074 = vmatmul.mubr.msk.f32.gmra.mxu0 %vm414_vm0, %v405_v31 }
  0x75   : > { %3076 = vmatprep.mubr.msk.f32.mxu0 %vm414_vm0, %v406_v32 }
  0x78   : > { %3077 = vmatmul.mubr.msk.f32.gmra.mxu0 %vm414_vm0, %v407_v33 }
  0x79   : > { %3079 = vmatprep.mubr.msk.f32.mxu0 %vm414_vm0, %v408_v34 }
  0x7c   : > { %3080 = vmatmul.mubr.msk.f32.gmra.mxu0 %vm414_vm0, %v409_v35 }
 0x100   : > { %v3036_v54 = vpop.f32.mrf.mxu0 }
 0x101   : > { %v744_v56 = vmul.f32 %v3036_v54, %v3943_v53 }
 0x102   : > { %v577_v57 = vpop.f32.mrf.mxu0 }
 0x103   : > { %v3952_v58 = vadd.f32 %v3948_v55, %v744_v56  ;;  %v743_v59 = vmul.f32 %v3943_v53, %v577_v57 }
 0x104   : > { %v3039_v60 = vpop.f32.mrf.mxu0 }
 0x105   : > { %v2853_v61 = vmul.f32 -1.442695, %v3952_v58  ;;  %v3957_v62 = vadd.f32 %v3948_v55, %v743_v59  ;;  %v746_v63 = vmul.f32 %v3039_v60, %v3943_v53 }
 0x106   : > { %v587_v0 = vpop.f32.mrf.mxu0 }
 0x107   : > { %3245 = vpow2.f32 %v2853_v61  ;;  %v2852_v1 = vmul.f32 -1.442695, %v3957_v62  ;;  %v3962_v2 = vadd.f32 %v3948_v55, %v746_v63  ;;  %v745_v3 = vmul.f32 %v3943_v53, %v587_v0  ;;  %v4025_v63 = vld [vmem:[%s5422_s4 + $0x1] ss:$0 sm:$0xff]  ;;  %v1228_v0 = vld [vmem:[#allocation2 + $0x9] sm:$0xff] }
 0x108   : > { %v3042_v4 = vpop.f32.mrf.mxu0 }
 0x109   : > { %3247 = vpow2.f32 %v2852_v1  ;;  %v2855_v5 = vmul.f32 -1.442695, %v3962_v2  ;;  %v3967_v6 = vadd.f32 %v3948_v55, %v745_v3  ;;  %v748_v7 = vmul.f32 %v3042_v4, %v3943_v53 }
 0x10a   : > { %v597_v8 = vpop.f32.mrf.mxu0 }
 0x10b   : > { %3249 = vpow2.f32 %v2855_v5  ;;  %v2854_v9 = vmul.f32 -1.442695, %v3967_v6  ;;  %v3972_v10 = vadd.f32 %v3948_v55, %v748_v7  ;;  %v747_v11 = vmul.f32 %v3943_v53, %v597_v8 }
 0x10c   : > { %v3045_v12 = vpop.f32.mrf.mxu0  ;;  %v1162_v5 = vmul.f32 0.0, %v4017_v51  ;;  %v1263_v7 = vmul.f32 %v4025_v63, %v1227_v52 }
 0x10d   : > { %3251 = vpow2.f32 %v2854_v9  ;;  %v2857_v13 = vmul.f32 -1.442695, %v3972_v10  ;;  %v3977_v14 = vadd.f32 %v3948_v55, %v747_v11  ;;  %v750_v15 = vmul.f32 %v3045_v12, %v3943_v53  ;;  %v4039_v12 = vld [vmem:[%s5422_s4 + $0x2] ss:$0 sm:$0xff] }
 0x10e   : > { %v607_v16 = vpop.f32.mrf.mxu0 }
 0x10f   : > { %3253 = vpow2.f32 %v2857_v13  ;;  %v2856_v17 = vmul.f32 -1.442695, %v3977_v14  ;;  %v3982_v18 = vadd.f32 %v3948_v55, %v750_v15  ;;  %v749_v19 = vmul.f32 %v3943_v53, %v607_v16  ;;  %v1328_v13 = vld [vmem:[#allocation2 + $0x2] sm:$0xff] }
 0x110   : > { %v3048_v20 = vpop.f32.mrf.mxu0 }
 0x111   : > { %3255 = vpow2.f32 %v2856_v17  ;;  %v2859_v21 = vmul.f32 -1.442695, %v3982_v18  ;;  %v3987_v22 = vadd.f32 %v3948_v55, %v749_v19  ;;  %v752_v23 = vmul.f32 %v3048_v20, %v3943_v53 }
 0x112   : > { %v617_v24 = vpop.f32.mrf.mxu0  ;;  %v1264_v19 = vmul.f32 %v4025_v63, %v1228_v0 }
 0x113   : > { %3257 = vpow2.f32 %v2859_v21  ;;  %v2858_v25 = vmul.f32 -1.442695, %v3987_v22  ;;  %v3992_v26 = vadd.f32 %v3948_v55, %v752_v23  ;;  %v751_v27 = vmul.f32 %v3943_v53, %v617_v24  ;;  %v1329_v24 = vld [vmem:[#allocation2 + $0xa] sm:$0xff] }
 0x114   : > { %v3246_v28 = vpop.eup %3245  ;;  %v3051_v29 = vpop.f32.mrf.mxu0 }
 0x115   : > { %v911_v30 = vadd.f32 1.0, %v3246_v28  ;;  %3259 = vpow2.f32 %v2858_v25  ;;  %v2861_v31 = vmul.f32 -1.442695, %v3992_v26  ;;  %v3997_v32 = vadd.f32 %v3948_v55, %v751_v27 }
 0x116   : > { %v3248_v33 = vpop.eup %3247  ;;  %v754_v34 = vmul.f32 %v3051_v29, %v3943_v53  ;;  %v627_v35 = vpop.f32.mrf.mxu0  ;;  %v1295_v29 = vadd.f32 %v1263_v7, %v1162_v5 }
 0x117   : > { %3261 = vrcp.f32 %v911_v30  ;;  %v910_v36 = vadd.f32 1.0, %v3248_v33  ;;  %v2860_v37 = vmul.f32 -1.442695, %v3997_v32  ;;  %v753_v38 = vmul.f32 %v3943_v53, %v627_v35 }
 0x118   : > { %v3250_v39 = vpop.eup %3249  ;;  %3263 = vpow2.f32 %v2861_v31  ;;  %v4003_v40 = vadd.f32 %v3948_v55, %v754_v34  ;;  %v3054_v41 = vpop.f32.mrf.mxu0  ;;  %v1364_v30 = vmul.f32 %v4039_v12, %v1328_v13 }
 0x119   : > { %3265 = vrcp.f32 %v910_v36  ;;  %v913_v42 = vadd.f32 1.0, %v3250_v39  ;;  %v4006_v43 = vadd.f32 %v3948_v55, %v753_v38  ;;  %v756_v44 = vmul.f32 %v3054_v41, %v3943_v53 }
 0x11a   : > { %v3252_v45 = vpop.eup %3251  ;;  %3267 = vpow2.f32 %v2860_v37  ;;  %v2863_v46 = vmul.f32 -1.442695, %v4003_v40  ;;  %v637_v47 = vpop.f32.mrf.mxu0  ;;  %v1296_v38 = vadd.f32 %v1264_v19, %v1162_v5  ;;  %v1365_v39 = vmul.f32 %v4039_v12, %v1329_v24  ;;  %v4099_v24 = vld [vmem:[%s5422_s4 + $0x9] ss:$0 sm:$0xff] }
 0x11b   : > { %3269 = vrcp.f32 %v913_v42  ;;  %v912_v48 = vadd.f32 1.0, %v3252_v45  ;;  %v2862_v49 = vmul.f32 -1.442695, %v4006_v43  ;;  %v4012_v50 = vadd.f32 %v3948_v55, %v756_v44 }
 0x11c   : > { %v3254_v54 = vpop.eup %3253  ;;  %3271 = vpow2.f32 %v2863_v46  ;;  %v755_v56 = vmul.f32 %v3943_v53, %v637_v47  ;;  %v3057_v57 = vpop.f32.mrf.mxu0 }
 0x11d   : > { %3273 = vrcp.f32 %v912_v48  ;;  %v915_v59 = vadd.f32 1.0, %v3254_v54  ;;  %v2865_v60 = vmul.f32 -1.442695, %v4012_v50  ;;  %v758_v61 = vmul.f32 %v3057_v57, %v3943_v53 }
 0x11e   : > { %v3256_v1 = vpop.eup %3255  ;;  %3275 = vpow2.f32 %v2862_v49  ;;  %v4028_v3 = vadd.f32 %v3948_v55, %v755_v56  ;;  %v647_v4 = vpop.f32.mrf.mxu0 }
 0x11f   : > { %3277 = vrcp.f32 %v915_v59  ;;  %v914_v8 = vadd.f32 1.0, %v3256_v1  ;;  %v4033_v9 = vadd.f32 %v3948_v55, %v758_v61  ;;  %v757_v11 = vmul.f32 %v3943_v53, %v647_v4  ;;  %v4072_v59 = vld [vmem:[%s5422_s4 + $0x5] ss:$0 sm:$0xff] }
 0x120   : > { %v3258_v15 = vpop.eup %3257  ;;  %3279 = vpow2.f32 %v2865_v60  ;;  %v2864_v16 = vmul.f32 -1.442695, %v4028_v3  ;;  %v3060_v17 = vpop.f32.mrf.mxu0  ;;  %v4074_v1 = vadd.f32 %v1364_v30, %v1295_v29 }
 0x121   : > { %3281 = vrcp.f32 %v914_v8  ;;  %v917_v20 = vadd.f32 1.0, %v3258_v15  ;;  %v2867_v21 = vmul.f32 -1.442695, %v4033_v9  ;;  %v4045_v23 = vadd.f32 %v3948_v55, %v757_v11 }
 0x122   : > { %v3260_v25 = vpop.eup %3259  ;;  %3283 = vpow2.f32 %v2864_v16  ;;  %v760_v27 = vmul.f32 %v3060_v17, %v3943_v53  ;;  %v657_v28 = vpop.f32.mrf.mxu0 }
 0x123   : > { %3285 = vrcp.f32 %v917_v20  ;;  %v916_v31 = vadd.f32 1.0, %v3260_v25  ;;  %v2866_v33 = vmul.f32 -1.442695, %v4045_v23  ;;  %v759_v34 = vmul.f32 %v3943_v53, %v657_v28 }
 0x124   : > { %v3262_v35 = vpop.eup %3261  ;;  %3287 = vpow2.f32 %v2867_v21  ;;  %v4052_v36 = vadd.f32 %v3948_v55, %v760_v27  ;;  %v3063_v37 = vpop.f32.mrf.mxu0 }
 0x125   : > { %v3264_v41 = vpop.eup %3263  ;;  %v1007_v42 = vmul.f32 %v3262_v35, %v3952_v58  ;;  %3289 = vrcp.f32 %v916_v31  ;;  %v4057_v44 = vadd.f32 %v3948_v55, %v759_v34  ;;  %v762_v45 = vmul.f32 %v3063_v37, %v3943_v53 }
 0x126   : > { %v3266_v46 = vpop.eup %3265  ;;  %v919_v47 = vadd.f32 1.0, %v3264_v41  ;;  %3291 = vpow2.f32 %v2866_v33  ;;  %v2869_v48 = vmul.f32 -1.442695, %v4052_v36  ;;  %v667_v49 = vpop.f32.mrf.mxu0 }
 0x127   : > { %v3268_v52 = vpop.eup %3267  ;;  %1094 = vst [vmem:[#allocation2 + $0x21] sm:$0xff] %v1007_v42  ;;  %v4062_v54 = vmul.f32 %v3266_v46, %v3957_v62  ;;  %v2868_v56 = vmul.f32 -1.442695, %v4057_v44  ;;  %v4066_v58 = vadd.f32 %v3948_v55, %v762_v45  ;;  %v761_v57 = vmul.f32 %v3943_v53, %v667_v49 }
 0x128   : > { %v3270_v60 = vpop.eup %3269  ;;  %3293 = vrcp.f32 %v919_v47  ;;  %v918_v61 = vadd.f32 1.0, %v3268_v52  ;;  %v3066_v0 = vpop.f32.mrf.mxu0  ;;  %v4076_v62 = vadd.f32 %v1365_v39, %v1296_v38  ;;  %v4088_v17 = vmul.f32 %v4072_v59, %v1007_v42  ;;  %v4130_v47 = vld [vmem:[%s5422_s4 + $0x4] ss:$0 sm:$0xff] }
 0x129   : > { %v3272_v4 = vpop.eup %3271  ;;  %1093 = vst [vmem:[#allocation2 + $0x19] sm:$0xff] %v4062_v54  ;;  %v4080_v5 = vmul.f32 %v3270_v60, %v3962_v2  ;;  %3295 = vpow2.f32 %v2869_v48  ;;  %v2871_v7 = vmul.f32 -1.442695, %v4066_v58  ;;  %v4084_v8 = vadd.f32 %v3948_v55, %v761_v57 }
 0x12a   : > { %v3274_v11 = vpop.eup %3273  ;;  %3297 = vrcp.f32 %v918_v61  ;;  %v921_v13 = vadd.f32 1.0, %v3272_v4  ;;  %v764_v15 = vmul.f32 %v3066_v0, %v3943_v53  ;;  %v677_v16 = vpop.f32.mrf.mxu0 }
 0x12b   : > { %v3276_v19 = vpop.eup %3275  ;;  %1096 = vst [vmem:[#allocation2 + $0x39] sm:$0xff] %v4080_v5  ;;  %v4092_v2 = vmul.f32 %v3274_v11, %v3967_v6  ;;  %3299 = vpow2.f32 %v2868_v56  ;;  %v2870_v20 = vmul.f32 -1.442695, %v4084_v8  ;;  %v763_v21 = vmul.f32 %v3943_v53, %v677_v16 }
 0x12c   : > { %v3278_v25 = vpop.eup %3277  ;;  %3301 = vrcp.f32 %v921_v13  ;;  %v920_v27 = vadd.f32 1.0, %v3276_v19  ;;  %v4102_v28 = vadd.f32 %v3948_v55, %v764_v15  ;;  %v3069_v29 = vpop.f32.mrf.mxu0  ;;  %v1567_v6 = vmul.f32 %v4072_v59, %v4062_v54 }
 0x12d   : > { %v3280_v30 = vpop.eup %3279  ;;  %1095 = vst [vmem:[#allocation2 + $0x31] sm:$0xff] %v4092_v2  ;;  %v4108_v31 = vmul.f32 %v3278_v25, %v3972_v10  ;;  %3303 = vpow2.f32 %v2871_v7  ;;  %v4111_v33 = vadd.f32 %v3948_v55, %v763_v21  ;;  %v766_v34 = vmul.f32 %v3069_v29, %v3943_v53 }
 0x12e   : > { %v3282_v35 = vpop.eup %3281  ;;  %3305 = vrcp.f32 %v920_v27  ;;  %v923_v37 = vadd.f32 1.0, %v3280_v30  ;;  %v2873_v38 = vmul.f32 -1.442695, %v4102_v28  ;;  %v687_v39 = vpop.f32.mrf.mxu0  ;;  %v4117_v41 = vmul.f32 %v4099_v24, %v4080_v5 }
 0x12f   : > { %v3284_v42 = vpop.eup %3283  ;;  %1098 = vst [vmem:[#allocation2 + $0x51] sm:$0xff] %v4108_v31  ;;  %v4121_v10 = vmul.f32 %v3282_v35, %v3977_v14  ;;  %3307 = vpow2.f32 %v2870_v20  ;;  %v2872_v45 = vmul.f32 -1.442695, %v4111_v33  ;;  %v4125_v46 = vadd.f32 %v3948_v55, %v766_v34 }
 0x130   : > { %v3286_v48 = vpop.eup %3285  ;;  %3309 = vrcp.f32 %v923_v37  ;;  %v922_v49 = vadd.f32 1.0, %v3284_v42  ;;  %v765_v52 = vmul.f32 %v3943_v53, %v687_v39  ;;  %v3072_v56 = vpop.f32.mrf.mxu0  ;;  %v4133_v57 = vld [vmem:[#allocation2 + $0x18] sm:$0xff]  ;;  %v4137_v14 = vmul.f32 %v4099_v24, %v4092_v2  ;;  %v4171_v39 = vld [vmem:[%s5422_s4 + $0x6] ss:$0 sm:$0xff] }
 0x131   : > { %v3288_v60 = vpop.eup %3287  ;;  %1097 = vst [vmem:[#allocation2 + $0x49] sm:$0xff] %v4121_v10  ;;  %v4141_v61 = vmul.f32 %v3286_v48, %v3982_v18  ;;  %3311 = vpow2.f32 %v2873_v38  ;;  %v2875_v0 = vmul.f32 -1.442695, %v4125_v46  ;;  %v768_v4 = vmul.f32 %v3072_v56, %v3943_v53  ;;  %v4158_v25 = vld [vmem:[#allocation2 + $0x1a] sm:$0xff] }
 0x132   : > { %v3290_v7 = vpop.eup %3289  ;;  %3313 = vrcp.f32 %v922_v49  ;;  %v925_v11 = vadd.f32 1.0, %v3288_v60  ;;  %v4146_v13 = vadd.f32 %v3948_v55, %v765_v52  ;;  %v697_v15 = vpop.f32.mrf.mxu0  ;;  %v1466_v16 = vmul.f32 %v4130_v47, %v4133_v57 }
 0x133   : > { %v3292_v19 = vpop.eup %3291  ;;  %1100 = vst [vmem:[#allocation2 + $0x69] sm:$0xff] %v4141_v61  ;;  %v4152_v18 = vmul.f32 %v3290_v7, %v3987_v22  ;;  %3315 = vpow2.f32 %v2872_v45  ;;  %v4155_v20 = vadd.f32 %v3948_v55, %v768_v4  ;;  %v767_v21 = vmul.f32 %v3943_v53, %v697_v15  ;;  %v4183_v4 = vld [vmem:[%s5422_s4 + $0x8] ss:$0 sm:$0xff] }
 0x134   : > { %3317 = vrcp.f32 %v925_v11  ;;  %v924_v27 = vadd.f32 1.0, %v3292_v19  ;;  %v2874_v29 = vmul.f32 -1.442695, %v4146_v13  ;;  %v3075_v30 = vpop.f32.mrf.mxu0  ;;  %v1498_v34 = vadd.f32 %v1466_v16, %v4074_v1 }
 0x135   : > { %v3294_v35 = vpop.eup %3293  ;;  %1099 = vst [vmem:[#allocation2 + $0x61] sm:$0xff] %v4152_v18  ;;  %3319 = vpow2.f32 %v2875_v0  ;;  %v2877_v22 = vmul.f32 -1.442695, %v4155_v20  ;;  %v4165_v37 = vadd.f32 %v3948_v55, %v767_v21  ;;  %v770_v38 = vmul.f32 %v3075_v30, %v3943_v53 }
 0x136   : > { %v3296_v42 = vpop.eup %3295  ;;  %v1015_v45 = vmul.f32 %v3294_v35, %v3992_v26  ;;  %3321 = vrcp.f32 %v924_v27  ;;  %v707_v1 = vpop.f32.mrf.mxu0  ;;  %v1599_v48 = vadd.f32 %v1567_v6, %v1498_v34  ;;  %v1668_v49 = vmul.f32 %v4171_v39, %v4158_v25  ;;  %v4185_v26 = vld [vmem:[#allocation2 + $0x30] sm:$0xff] }
 0x137   : > { %v3298_v52 = vpop.eup %3297  ;;  %v927_v56 = vadd.f32 1.0, %v3296_v42  ;;  %3323 = vpow2.f32 %v2874_v29  ;;  %v2876_v60 = vmul.f32 -1.442695, %v4165_v37  ;;  %v4178_v0 = vadd.f32 %v3948_v55, %v770_v38 }
 0x138   : > { %v3300_v7 = vpop.eup %3299  ;;  %1102 = vst [vmem:[#allocation2 + $0x81] sm:$0xff] %v1015_v45  ;;  %v1014_v6 = vmul.f32 %v3298_v52, %v3997_v32  ;;  %3325 = vpow2.f32 %v2877_v22  ;;  %v769_v11 = vmul.f32 %v3943_v53, %v707_v1  ;;  %v3078_v15 = vpop.f32.mrf.mxu0  ;;  %v1700_v16 = vadd.f32 %v1668_v49, %v1599_v48 }
 0x139   : > { %v3302_v19 = vpop.eup %3301  ;;  %3327 = vrcp.f32 %v927_v56  ;;  %v926_v21 = vadd.f32 1.0, %v3300_v7  ;;  %v2879_v27 = vmul.f32 -1.442695, %v4178_v0  ;;  %v772_v29 = vmul.f32 %v3078_v15, %v3943_v53  ;;  %v4207_v15 = vld [vmem:[#allocation2 + $0x32] sm:$0xff] }
 0x13a   : > { %v3304_v30 = vpop.eup %3303  ;;  %1101 = vst [vmem:[#allocation2 + $0x79] sm:$0xff] %v1014_v6  ;;  %v1017_v34 = vmul.f32 %v3302_v19, %v4003_v40  ;;  %3329 = vpow2.f32 %v2876_v60  ;;  %v4193_v35 = vadd.f32 %v3948_v55, %v769_v11  ;;  %v717_v32 = vpop.f32.mrf.mxu0  ;;  %v1771_v22 = vmul.f32 %v4183_v4, %v4185_v26 }
 0x13b   : > { %v3306_v38 = vpop.eup %3305  ;;  %3331 = vrcp.f32 %v926_v21  ;;  %v929_v42 = vadd.f32 1.0, %v3304_v30  ;;  %v4198_v45 = vadd.f32 %v3948_v55, %v772_v29  ;;  %v771_v1 = vmul.f32 %v3943_v53, %v717_v32  ;;  %v4212_v29 = vld [vmem:[#allocation2 + $0x20] sm:$0xff] }
 0x13c   : > { %v3308_v48 = vpop.eup %3307  ;;  %1104 = vst [vmem:[#allocation2 + $0x99] sm:$0xff] %v1017_v34  ;;  %v1016_v40 = vmul.f32 %v3306_v38, %v4006_v43  ;;  %3333 = vpow2.f32 %v2879_v27  ;;  %v2878_v49 = vmul.f32 -1.442695, %v4193_v35  ;;  %v3081_v52 = vpop.f32.mrf.mxu0  ;;  %v1803_v56 = vadd.f32 %v1771_v22, %v1700_v16  ;;  %v4219_v38 = vld [vmem:[%s5422_s4 + $0xa] ss:$0 sm:$0xff] }
 0x13d   : > { %v3310_v60 = vpop.eup %3309  ;;  %3335 = vrcp.f32 %v929_v42  ;;  %v928_v7 = vadd.f32 1.0, %v3308_v48  ;;  %v2881_v6 = vmul.f32 -1.442695, %v4198_v45  ;;  %v4205_v11 = vadd.f32 %v3948_v55, %v771_v1 }
 0x13e   : > { %v3312_v19 = vpop.eup %3311  ;;  %1103 = vst [vmem:[#allocation2 + $0x91] sm:$0xff] %v1016_v40  ;;  %v1019_v21 = vmul.f32 %v3310_v60, %v4012_v50  ;;  %3337 = vpow2.f32 %v2878_v49  ;;  %v774_v43 = vmul.f32 %v3081_v52, %v3943_v53  ;;  %v727_v27 = vpop.f32.mrf.mxu0  ;;  %v1904_v16 = vadd.f32 %v4137_v14, %v1803_v56  ;;  %v4233_v49 = vld [vmem:[%s5423_s5] ss:$0 sm:$0xff]  ;;  %v4237_v52 = vld [vmem:[#allocation2 + $0x22] sm:$0xff] }
 0x13f   : > { %v3314_v30 = vpop.eup %3313  ;;  %3339 = vrcp.f32 %v928_v7  ;;  %v931_v34 = vadd.f32 1.0, %v3312_v19  ;;  %v2880_v32 = vmul.f32 -1.442695, %v4205_v11  ;;  %v773_v22 = vmul.f32 %v3943_v53, %v727_v27  ;;  %v4247_v27 = vld [vmem:[%s5424_s6] ss:$0 sm:$0xff] }
 0x140   : > { %v3316_v50 = vpop.eup %3315  ;;  %1106 = vst [vmem:[#allocation2 + $0xb1] sm:$0xff] %v1019_v21  ;;  %v1018_v42 = vmul.f32 %v3314_v30, %v4028_v3  ;;  %3341 = vpow2.f32 %v2881_v6  ;;  %v4223_v14 = vadd.f32 %v3948_v55, %v774_v43  ;;  %v1973_v1 = vmul.f32 %v4219_v38, %v4207_v15 }
 0x141   : > { %v3318_v48 = vpop.eup %3317  ;;  %3343 = vrcp.f32 %v931_v34  ;;  %v930_v40 = vadd.f32 1.0, %v3316_v50  ;;  %v4228_v53 = vadd.f32 %v3948_v55, %v773_v22  ;;  %v1467_v3 = vmul.f32 %v4130_v47, %v4212_v29  ;;  %v4241_v55 = vld [vmem:[#allocation2 + $0x38] sm:$0xff] }
 0x142   : > { %v3320_v56 = vpop.eup %3319  ;;  %1105 = vst [vmem:[#allocation2 + $0xa9] sm:$0xff] %v1018_v42  ;;  %v1021_v60 = vmul.f32 %v3318_v48, %v4033_v9  ;;  %3345 = vpow2.f32 %v2880_v32  ;;  %v2883_v7 = vmul.f32 -1.442695, %v4223_v14  ;;  %v2005_v6 = vadd.f32 %v1973_v1, %v1904_v16 }
 0x143   : > { %v3322_v19 = vpop.eup %3321  ;;  %3347 = vrcp.f32 %v930_v40  ;;  %v933_v21 = vadd.f32 1.0, %v3320_v56  ;;  %v2882_v43 = vmul.f32 -1.442695, %v4228_v53  ;;  %v1499_v30 = vadd.f32 %v1467_v3, %v4076_v62 }
 0x144   : > { %v3324_v34 = vpop.eup %3323  ;;  %1108 = vst [vmem:[#allocation2 + $0xc9] sm:$0xff] %v1021_v60  ;;  %v1020_v9 = vmul.f32 %v3322_v19, %v4045_v23  ;;  %3349 = vpow2.f32 %v2883_v7  ;;  %v2044_v16 = vmul.f32 %v4233_v49, %v2005_v6  ;;  %v1669_v32 = vmul.f32 %v4171_v39, %v4237_v52  ;;  %v4263_v7 = vld [vmem:[#allocation2 + $0x3a] sm:$0xff] }
 0x145   : > { %v3326_v22 = vpop.eup %3325  ;;  %3351 = vrcp.f32 %v933_v21  ;;  %v932_v50 = vadd.f32 1.0, %v3324_v34  ;;  %v1600_v42 = vadd.f32 %v4088_v17, %v1499_v30  ;;  %v1772_v1 = vmul.f32 %v4183_v4, %v4241_v55 }
 0x146   : > { %v3328_v48 = vpop.eup %3327  ;;  %1107 = vst [vmem:[#allocation2 + $0xc1] sm:$0xff] %v1020_v9  ;;  %v935_v62 = vadd.f32 1.0, %v3326_v22  ;;  %3353 = vpow2.f32 %v2882_v43  ;;  %v4258_v23 = vadd.f32 %v4247_v27, %v2044_v16  ;;  %v1164_v40 = vmul.f32 %v4017_v51, %v4133_v57 }
 0x147   : > { %v3330_v3 = vpop.eup %3329  ;;  %v1023_v56 = vmul.f32 %v3328_v48, %v4052_v36  ;;  %3355 = vrcp.f32 %v932_v50  ;;  %v1701_v60 = vadd.f32 %v1669_v32, %v1600_v42  ;;  %v1265_v17 = vmul.f32 %v4025_v63, %v4062_v54 }
 0x148   : > { %v3332_v6 = vpop.eup %3331  ;;  %3357 = vrcp.f32 %v935_v62  ;;  %v934_v19 = vadd.f32 1.0, %v3330_v3  ;;  %v2901_v21 = vmul.f32 -1.442695, %v4258_v23  ;;  %v1366_v43 = vmul.f32 %v4039_v12, %v4158_v25 }
 0x149   : > { %v3334_v30 = vpop.eup %3333  ;;  %1110 = vst [vmem:[#allocation2 + $0xe1] sm:$0xff] %v1023_v56  ;;  %v1022_v57 = vmul.f32 %v3332_v6, %v4057_v44  ;;  %v1804_v36 = vadd.f32 %v1772_v1, %v1701_v60  ;;  %v1297_v34 = vadd.f32 %v1265_v17, %v1164_v40  ;;  %v1468_v9 = vmul.f32 %v4130_v47, %v4185_v26  ;;  %v1230_v44 = vld [vmem:[#allocation2 + $0x21] sm:$0xff] }
 0x14a   : > { %v3336_v16 = vpop.eup %3335  ;;  %3359 = vrcp.f32 %v934_v19  ;;  %v937_v54 = vadd.f32 1.0, %v3334_v30  ;;  %v1974_v32 = vmul.f32 %v4219_v38, %v4263_v7  ;;  %v1569_v62 = vmul.f32 %v4072_v59, %v4092_v2  ;;  %v4282_v6 = vld [vmem:[#allocation2 + $0x48] sm:$0xff] }
 0x14b   : > { %v3338_v22 = vpop.eup %3337  ;;  %1109 = vst [vmem:[#allocation2 + $0xd9] sm:$0xff] %v1022_v57  ;;  %v1025_v50 = vmul.f32 %v3336_v16, %v4066_v58  ;;  %3361 = vpow2.f32 %v2901_v21  ;;  %v1905_v25 = vadd.f32 %v4117_v41, %v1804_v36  ;;  %v1398_v42 = vadd.f32 %v1366_v43, %v1297_v34  ;;  %v4291_v16 = vld [vmem:[#allocation2 + $0x4a] sm:$0xff] }
 0x14c   : > { %v3340_v1 = vpop.eup %3339  ;;  %3363 = vrcp.f32 %v937_v54  ;;  %v936_v48 = vadd.f32 1.0, %v3338_v22  ;;  %v1670_v58 = vmul.f32 %v4171_v39, %v4207_v15  ;;  %v1165_v19 = vmul.f32 %v4017_v51, %v4212_v29 }
 0x14d   : > { %v3342_v40 = vpop.eup %3341  ;;  %1112 = vst [vmem:[#allocation2 + $0xf9] sm:$0xff] %v1025_v50  ;;  %v1024_v3 = vmul.f32 %v3340_v1, %v4084_v8  ;;  %v2006_v56 = vadd.f32 %v1974_v32, %v1905_v25  ;;  %v1500_v60 = vadd.f32 %v1468_v9, %v1398_v42  ;;  %v1266_v21 = vmul.f32 %v4025_v63, %v1230_v44 }
 0x14e   : > { %v3344_v17 = vpop.eup %3343  ;;  %3365 = vrcp.f32 %v936_v48  ;;  %v939_v41 = vadd.f32 1.0, %v3342_v40  ;;  %v1367_v36 = vmul.f32 %v4039_v12, %v4237_v52  ;;  %v1469_v29 = vmul.f32 %v4130_v47, %v4241_v55 }
 0x14f   : > { %v3346_v43 = vpop.eup %3345  ;;  %1111 = vst [vmem:[#allocation2 + $0xf1] sm:$0xff] %v1024_v3  ;;  %v1027_v30 = vmul.f32 %v3344_v17, %v4102_v28  ;;  %v2045_v8 = vmul.f32 %v4233_v49, %v2006_v56  ;;  %v1601_v57 = vadd.f32 %v1569_v62, %v1500_v60  ;;  %v1298_v54 = vadd.f32 %v1266_v21, %v1165_v19 }
 0x150   : > { %v3348_v34 = vpop.eup %3347  ;;  %3367 = vrcp.f32 %v939_v41  ;;  %v938_v9 = vadd.f32 1.0, %v3346_v43  ;;  %v1773_v52 = vmul.f32 %v4183_v4, %v4282_v6  ;;  %v1874_v44 = vmul.f32 %v4099_v24, %v4121_v10  ;;  %v4309_v41 = vld [vmem:[#allocation2 + $0x50] sm:$0xff] }
 0x151   : > { %v3350_v32 = vpop.eup %3349  ;;  %1114 = vst [vmem:[#allocation2 + $0x111] sm:$0xff] %v1027_v30  ;;  %v1026_v22 = vmul.f32 %v3348_v34, %v4111_v33  ;;  %v4297_v28 = vadd.f32 %v4247_v27, %v2045_v8  ;;  %v1702_v50 = vadd.f32 %v1670_v58, %v1601_v57  ;;  %v1399_v1 = vadd.f32 %v1367_v36, %v1298_v54 }
 0x152   : > { %v3352_v25 = vpop.eup %3351  ;;  %3369 = vrcp.f32 %v938_v9  ;;  %v941_v42 = vadd.f32 1.0, %v3350_v32  ;;  %v1975_v3 = vmul.f32 %v4219_v38, %v4291_v16  ;;  %v1570_v17 = vmul.f32 %v4072_v59, %v4080_v5  ;;  %v4319_v9 = vld [vmem:[#allocation2 + $0x52] sm:$0xff] }
 0x153   : > { %v3354_v48 = vpop.eup %3353  ;;  %1113 = vst [vmem:[#allocation2 + $0x109] sm:$0xff] %v1026_v22  ;;  %v1029_v62 = vmul.f32 %v3352_v25, %v4125_v46  ;;  %v2902_v33 = vmul.f32 -1.442695, %v4297_v28  ;;  %v1805_v40 = vadd.f32 %v1773_v52, %v1702_v50  ;;  %v1501_v58 = vadd.f32 %v1469_v29, %v1399_v1 }
 0x154   : > { %v3356_v56 = vpop.eup %3355  ;;  %3371 = vrcp.f32 %v941_v42  ;;  %v940_v60 = vadd.f32 1.0, %v3354_v48  ;;  %v1671_v43 = vmul.f32 %v4171_v39, %v4263_v7  ;;  %v1166_v57 = vmul.f32 %v4017_v51, %v4185_v26 }
 0x155   : > { %v3358_v19 = vpop.eup %3357  ;;  %1116 = vst [vmem:[#allocation2 + $0x129] sm:$0xff] %v1029_v62  ;;  %v1028_v21 = vmul.f32 %v3356_v56, %v4146_v13  ;;  %3373 = vpow2.f32 %v2902_v33  ;;  %v1906_v46 = vadd.f32 %v1874_v44, %v1805_v40  ;;  %v1602_v8 = vadd.f32 %v1570_v17, %v1501_v58 }
 0x156   : > { %v1031_v30 = vmul.f32 %v3358_v19, %v4155_v20  ;;  %3375 = vrcp.f32 %v940_v60  ;;  %v1774_v34 = vmul.f32 %v4183_v4, %v4309_v41  ;;  %v1267_v13 = vmul.f32 %v4025_v63, %v4092_v2  ;;  %v1232_v2 = vld [vmem:[#allocation2 + $0x39] sm:$0xff]  ;;  %v4346_v60 = vld [vmem:[#allocation2 + $0x62] sm:$0xff] }
 0x157   : > { %v3360_v36 = vpop.eup %3359  ;;  %1115 = vst [vmem:[#allocation2 + $0x121] sm:$0xff] %v1028_v21  ;;  %v2007_v5 = vadd.f32 %v1975_v3, %v1906_v46  ;;  %v1703_v29 = vadd.f32 %v1671_v43, %v1602_v8  ;;  %v1875_v32 = vmul.f32 %v4099_v24, %v4108_v31  ;;  %v1368_v26 = vmul.f32 %v4039_v12, %v4207_v15  ;;  %v4336_v15 = vld [vmem:[#allocation2 + $0x60] sm:$0xff]  ;;  %v1536_v46 = vld [vmem:[#allocation2 + $0x51] sm:$0xff] }
 0x158   : > { %v3362_v54 = vpop.eup %3361  ;;  %1118 = vst [vmem:[#allocation2 + $0x141] sm:$0xff] %v1031_v30  ;;  %v1030_v20 = vmul.f32 %v3360_v36, %v4165_v37  ;;  %v1299_v25 = vadd.f32 %v1267_v13, %v1166_v57  ;;  %v1470_v42 = vmul.f32 %v4130_v47, %v4282_v6  ;;  %v1976_v1 = vmul.f32 %v4219_v38, %v4319_v9  ;;  %v1233_v57 = vld [vmem:[#allocation2 + $0x49] sm:$0xff] }
 0x159   : > { %v3364_v22 = vpop.eup %3363  ;;  %v2211_v50 = vadd.f32 1.0, %v3362_v54  ;;  %v2046_v52 = vmul.f32 %v4233_v49, %v2007_v5  ;;  %v1806_v37 = vadd.f32 %v1774_v34, %v1703_v29  ;;  %v1571_v31 = vmul.f32 %v4072_v59, %v4121_v10 }
 0x15a   : > { %1117 = vst [vmem:[#allocation2 + $0x139] sm:$0xff] %v1030_v20  ;;  %v1033_v44 = vmul.f32 %v3364_v22, %v4178_v0  ;;  %v1400_v33 = vadd.f32 %v1368_v26, %v1299_v25  ;;  %v1167_v40 = vmul.f32 %v4017_v51, %v4241_v55  ;;  %v1672_v56 = vmul.f32 %v4171_v39, %v4291_v16  ;;  %v4366_v22 = vld [vmem:[#allocation2 + $0x68] sm:$0xff] }
 0x15b   : > { %v3366_v48 = vpop.eup %3365  ;;  %3377 = vrcp.f32 %v2211_v50  ;;  %v4339_v62 = vadd.f32 %v4247_v27, %v2046_v52  ;;  %v1907_v3 = vadd.f32 %v1875_v32, %v1806_v37  ;;  %v1268_v10 = vmul.f32 %v4025_v63, %v1232_v2 }
 0x15c   : > { %1120 = vst [vmem:[#allocation2 + $0x159] sm:$0xff] %v1033_v44  ;;  %v1032_v0 = vmul.f32 %v3366_v48, %v4193_v35  ;;  %v1502_v19 = vadd.f32 %v1470_v42, %v1400_v33  ;;  %v1775_v21 = vmul.f32 %v4183_v4, %v4336_v15  ;;  %v1369_v55 = vmul.f32 %v4039_v12, %v4263_v7  ;;  %v1537_v33 = vld [vmem:[#allocation2 + $0x61] sm:$0xff] }
 0x15d   : > { %v3368_v58 = vpop.eup %3367  ;;  %v2903_v17 = vmul.f32 -1.442695, %v4339_v62  ;;  %v2008_v43 = vadd.f32 %v1976_v1, %v1907_v3  ;;  %v1300_v30 = vadd.f32 %v1268_v10, %v1167_v40  ;;  %v1471_v8 = vmul.f32 %v4130_v47, %v4309_v41 }
 0x15e   : > { %1119 = vst [vmem:[#allocation2 + $0x151] sm:$0xff] %v1032_v0  ;;  %v1035_v35 = vmul.f32 %v3368_v58, %v4198_v45  ;;  %v1603_v5 = vadd.f32 %v1571_v31, %v1502_v19  ;;  %v1876_v34 = vmul.f32 %v4099_v24, %v4152_v18  ;;  %v1977_v13 = vmul.f32 %v4219_v38, %v4346_v60  ;;  %v4377_v31 = vld [vmem:[#allocation2 + $0x6a] sm:$0xff] }
 0x15f   : > { %v3370_v36 = vpop.eup %3369  ;;  %3379 = vpow2.f32 %v2903_v17  ;;  %v2047_v45 = vmul.f32 %v4233_v49, %v2008_v43  ;;  %v1401_v54 = vadd.f32 %v1369_v55, %v1300_v30  ;;  %v1572_v20 = vmul.f32 %v4072_v59, %v1536_v46  ;;  %v4390_v55 = vld [vmem:[#allocation2 + $0x78] sm:$0xff] }
 0x160   : > { %1122 = vst [vmem:[#allocation2 + $0x171] sm:$0xff] %v1035_v35  ;;  %v1034_v7 = vmul.f32 %v3370_v36, %v4205_v11  ;;  %v1704_v32 = vadd.f32 %v1672_v56, %v1603_v5  ;;  %v1673_v26 = vmul.f32 %v4171_v39, %v4319_v9  ;;  %v1168_v18 = vmul.f32 %v4017_v51, %v4282_v6  ;;  %v4392_v35 = vld [vmem:[#allocation2 + $0x79] sm:$0xff] }
 0x161   : > { %v3372_v29 = vpop.eup %3371  ;;  %v1269_v50 = vmul.f32 %v4025_v63, %v1233_v57  ;;  %v4373_v25 = vadd.f32 %v4247_v27, %v2047_v45  ;;  %v1503_v42 = vadd.f32 %v1471_v8, %v1401_v54  ;;  %v1370_v2 = vmul.f32 %v4039_v12, %v4291_v16  ;;  %v4394_v43 = vld [vmem:[#allocation2 + $0x7a] sm:$0xff] }
 0x162   : > { %v3374_v52 = vpop.eup %3373  ;;  %1121 = vst [vmem:[#allocation2 + $0x169] sm:$0xff] %v1034_v7  ;;  %v1037_v11 = vmul.f32 %v3372_v29, %v4223_v14  ;;  %v1807_v1 = vadd.f32 %v1775_v21, %v1704_v32  ;;  %v1472_v6 = vmul.f32 %v4130_v47, %v4336_v15  ;;  %v1776_v3 = vmul.f32 %v4183_v4, %v4366_v22 }
 0x163   : > { %v3376_v44 = vpop.eup %3375  ;;  %v2212_v37 = vadd.f32 1.0, %v3374_v52  ;;  %v1301_v48 = vadd.f32 %v1269_v50, %v1168_v18  ;;  %v2904_v40 = vmul.f32 -1.442695, %v4373_v25  ;;  %v1604_v0 = vadd.f32 %v1572_v20, %v1503_v42  ;;  %v4419_v42 = vld [vmem:[#allocation2 + $0x80] sm:$0xff] }
 0x164   : > { %1124 = vst [vmem:[#allocation2 + $0x189] sm:$0xff] %v1037_v11  ;;  %v1036_v14 = vmul.f32 %v3376_v44, %v4228_v53  ;;  %v1908_v16 = vadd.f32 %v1876_v34, %v1807_v1  ;;  %v1877_v56 = vmul.f32 %v4099_v24, %v4141_v61  ;;  %v1978_v17 = vmul.f32 %v4219_v38, %v4377_v31 }
 0x165   : > { %3381 = vrcp.f32 %v2212_v37  ;;  %v1402_v10 = vadd.f32 %v1370_v2, %v1301_v48  ;;  %v1705_v58 = vadd.f32 %v1673_v26, %v1604_v0  ;;  %v1573_v53 = vmul.f32 %v4072_v59, %v1537_v33 }
 0x166   : > { %1123 = vst [vmem:[#allocation2 + $0x181] sm:$0xff] %v1036_v14  ;;  %3383 = vpow2.f32 %v2904_v40  ;;  %v2009_v19 = vadd.f32 %v1977_v13, %v1908_v16  ;;  %v1169_v61 = vmul.f32 %v4017_v51, %v4309_v41  ;;  %v1270_v30 = vmul.f32 %v4025_v63, %v1536_v46  ;;  %v1538_v13 = vld [vmem:[#allocation2 + $0x69] sm:$0xff]  ;;  %v4425_v14 = vld [vmem:[#allocation2 + $0x81] sm:$0xff] }
 0x167   : > { %v1504_v21 = vadd.f32 %v1472_v6, %v1402_v10  ;;  %v1808_v57 = vadd.f32 %v1776_v3, %v1705_v58  ;;  %v1674_v36 = vmul.f32 %v4171_v39, %v4346_v60  ;;  %v1371_v5 = vmul.f32 %v4039_v12, %v4319_v9 }
 0x168   : > { %v3378_v8 = vpop.eup %3377  ;;  %v1473_v34 = vmul.f32 %v4130_v47, %v4366_v22  ;;  %v2048_v45 = vmul.f32 %v4233_v49, %v2009_v19  ;;  %v1302_v41 = vadd.f32 %v1270_v30, %v1169_v61  ;;  %v1777_v46 = vmul.f32 %v4183_v4, %v4390_v55 }
 0x169   : > { %v2307_v7 = vmul.f32 %v3378_v8, %v4258_v23  ;;  %v1605_v54 = vadd.f32 %v1573_v53, %v1504_v21  ;;  %v1909_v20 = vadd.f32 %v1877_v56, %v1808_v57  ;;  %v1878_v29 = vmul.f32 %v4099_v24, %v4392_v35  ;;  %v4444_v8 = vld [vmem:[#allocation2 + $0x82] sm:$0xff] }
 0x16a   : > { %v1979_v9 = vmul.f32 %v4219_v38, %v4394_v43  ;;  %v4414_v32 = vadd.f32 %v4247_v27, %v2048_v45  ;;  %v1403_v23 = vadd.f32 %v1371_v5, %v1302_v41  ;;  %v1574_v18 = vmul.f32 %v4072_v59, %v1538_v13  ;;  %v4451_v41 = vld [vmem:[#allocation2 + $0x90] sm:$0xff] }
 0x16b   : > { %3114 = vmatprep.mubr.f32.mxu0 %v2307_v7  ;;  %v1706_v26 = vadd.f32 %v1674_v36, %v1605_v54  ;;  %v2010_v52 = vadd.f32 %v1978_v17, %v1909_v20  ;;  %v1675_v11 = vmul.f32 %v4171_v39, %v4377_v31  ;;  %v1170_v2 = vmul.f32 %v4017_v51, %v4336_v15 }
 0x16c   : > { %v3380_v50 = vpop.eup %3379  ;;  %v1271_v44 = vmul.f32 %v4025_v63, %v1537_v33  ;;  %v2905_v1 = vmul.f32 -1.442695, %v4414_v32  ;;  %v1505_v6 = vadd.f32 %v1473_v34, %v1403_v23  ;;  %v1372_v3 = vmul.f32 %v4039_v12, %v4346_v60 }
 0x16d   : > { %v2213_v37 = vadd.f32 1.0, %v3380_v50  ;;  %v1809_v48 = vadd.f32 %v1777_v46, %v1706_v26  ;;  %v2049_v40 = vmul.f32 %v4233_v49, %v2010_v52  ;;  %v1474_v16 = vmul.f32 %v4130_v47, %v4390_v55  ;;  %v4457_v26 = vld [vmem:[#allocation2 + $0x92] sm:$0xff] }
 0x16e   : > { %v1303_v0 = vadd.f32 %v1271_v44, %v1170_v2  ;;  %v1606_v56 = vadd.f32 %v1574_v18, %v1505_v6  ;;  %v1778_v33 = vmul.f32 %v4183_v4, %v4419_v42  ;;  %v1879_v58 = vmul.f32 %v4099_v24, %v4425_v14  ;;  %v4473_v2 = vld [vmem:[#allocation2 + $0x98] sm:$0xff]  ;;  %v4482_v6 = vld [vmem:[%s5422_s4] ss:$0 sm:$0xff] }
 0x16f   : > { %3385 = vrcp.f32 %v2213_v37  ;;  %v1910_v15 = vadd.f32 %v1878_v29, %v1809_v48  ;;  %v4435_v10 = vadd.f32 %v4247_v27, %v2049_v40  ;;  %v1575_v60 = vmul.f32 %v4072_v59, %v4392_v35  ;;  %v4475_v44 = vld [vmem:[#allocation2 + $0x99] sm:$0xff] }
 0x170   : > { %3387 = vpow2.f32 %v2905_v1  ;;  %v1404_v17 = vadd.f32 %v1372_v3, %v1303_v0  ;;  %v1707_v19 = vadd.f32 %v1675_v11, %v1606_v56  ;;  %v1676_v21 = vmul.f32 %v4171_v39, %v4394_v43 }
 0x171   : > { %v2011_v53 = vadd.f32 %v1979_v9, %v1910_v15  ;;  %v2906_v30 = vmul.f32 -1.442695, %v4435_v10  ;;  %v1171_v36 = vmul.f32 %v4017_v51, %v4366_v22  ;;  %v1272_v5 = vmul.f32 %v4025_v63, %v1538_v13  ;;  %v4455_v9 = vld [vmem:[#allocation2 + $0x91] sm:$0xff]  ;;  %v4494_v15 = vld [vmem:[%s5422_s4 + $0x1] ss:$0 sm:$0xff] }
 0x172   : > { %v3382_v61 = vpop.eup %3381  ;;  %v1506_v57 = vadd.f32 %v1474_v16, %v1404_v17  ;;  %v1810_v54 = vadd.f32 %v1778_v33, %v1707_v19  ;;  %v1373_v20 = vmul.f32 %v4039_v12, %v4377_v31  ;;  %v1980_v22 = vmul.f32 %v4219_v38, %v4444_v8  ;;  %v4489_v16 = vld [vmem:[#allocation2 + $0x9a] sm:$0xff] }
 0x173   : > { %v3384_v34 = vpop.eup %3383  ;;  %v2308_v7 = vmul.f32 %v3382_v61, %v4297_v28  ;;  %v2050_v45 = vmul.f32 %v4233_v49, %v2011_v53  ;;  %3389 = vpow2.f32 %v2906_v30  ;;  %v1304_v51 = vadd.f32 %v1272_v5, %v1171_v36 }
 0x174   : > { %v2214_v46 = vadd.f32 1.0, %v3384_v34  ;;  %v1607_v29 = vadd.f32 %v1575_v60, %v1506_v57  ;;  %v1911_v28 = vadd.f32 %v1879_v58, %v1810_v54  ;;  %v1475_v13 = vmul.f32 %v4130_v47, %v4419_v42  ;;  %v4508_v60 = vld [vmem:[%s5422_s4 + $0x2] ss:$0 sm:$0xff] }
 0x175   : > { %3115 = vmatmul.mubr.f32.vlgmr.msra.gmra.mxu0 %v2308_v7  ;;  %v4460_v63 = vadd.f32 %v4247_v27, %v2050_v45  ;;  %v1779_v31 = vmul.f32 %v4183_v4, %v4451_v41  ;;  %v1405_v23 = vadd.f32 %v1373_v20, %v1304_v51  ;;  %v1880_v52 = vmul.f32 %v4099_v24, %v4455_v9  ;;  %v4523_v51 = vld [vmem:[#allocation2 + $0xa8] sm:$0xff] }
 0x176   : > { %3391 = vrcp.f32 %v2214_v46  ;;  %v1708_v12 = vadd.f32 %v1676_v21, %v1607_v29  ;;  %v2012_v50 = vadd.f32 %v1980_v22, %v1911_v28  ;;  %v1981_v11 = vmul.f32 %v4219_v38, %v4457_v26  ;;  %v4525_v28 = vld [vmem:[#allocation2 + $0xa9] sm:$0xff] }
 0x177   : > { %v2907_v18 = vmul.f32 -1.442695, %v4460_v63  ;;  %v1507_v1 = vadd.f32 %v1475_v13, %v1405_v23  ;;  %v1576_v48 = vmul.f32 %v4072_v59, %v4425_v14  ;;  %v1172_v40 = vmul.f32 %v4482_v6, %v4390_v55 }
 0x178   : > { %v1811_v37 = vadd.f32 %v1779_v31, %v1708_v12  ;;  %v2051_v0 = vmul.f32 %v4233_v49, %v2012_v50  ;;  %v1677_v3 = vmul.f32 %v4171_v39, %v4444_v8  ;;  %v1273_v56 = vmul.f32 %v4494_v15, %v4392_v35  ;;  %v4536_v31 = vld [vmem:[#allocation2 + $0xaa] sm:$0xff] }
 0x179   : > { %3393 = vpow2.f32 %v2907_v18  ;;  %v1608_v58 = vadd.f32 %v1576_v48, %v1507_v1  ;;  %v1780_v55 = vmul.f32 %v4183_v4, %v4473_v2  ;;  %v1881_v17 = vmul.f32 %v4099_v24, %v4475_v44 }
 0x17a   : > { %v1912_v33 = vadd.f32 %v1880_v52, %v1811_v37  ;;  %v4503_v53 = vadd.f32 %v4247_v27, %v2051_v0  ;;  %v1305_v19 = vadd.f32 %v1273_v56, %v1172_v40  ;;  %v1374_v35 = vmul.f32 %v4508_v60, %v4394_v43  ;;  %v4550_v56 = vld [vmem:[%s5422_s4 + $0x5] ss:$0 sm:$0xff] }
 0x17b   : > { %v1476_v21 = vmul.f32 %v4130_v47, %v4451_v41  ;;  %v1709_v57 = vadd.f32 %v1677_v3, %v1608_v58  ;;  %v1982_v36 = vmul.f32 %v4219_v38, %v4489_v16  ;;  %v1577_v5 = vmul.f32 %v4072_v59, %v4455_v9  ;;  %v4554_v58 = vld [vmem:[#allocation2 + $0xb0] sm:$0xff] }
 0x17c   : > { %v3386_v61 = vpop.eup %3385  ;;  %v2013_v30 = vadd.f32 %v1981_v11, %v1912_v33  ;;  %v2908_v45 = vmul.f32 -1.442695, %v4503_v53  ;;  %v1406_v54 = vadd.f32 %v1374_v35, %v1305_v19  ;;  %v1173_v43 = vmul.f32 %v4482_v6, %v4419_v42 }
 0x17d   : > { %v3388_v34 = vpop.eup %3387  ;;  %v2309_v7 = vmul.f32 %v3386_v61, %v4339_v62  ;;  %v1812_v29 = vadd.f32 %v1780_v55, %v1709_v57  ;;  %v1274_v59 = vmul.f32 %v4494_v15, %v4425_v14  ;;  %v1375_v22 = vmul.f32 %v4508_v60, %v4444_v8  ;;  %v4562_v61 = vld [vmem:[#allocation2 + $0xb1] sm:$0xff] }
 0x17e   : > { %v2215_v20 = vadd.f32 1.0, %v3388_v34  ;;  %v2052_v46 = vmul.f32 %v4233_v49, %v2013_v30  ;;  %3395 = vpow2.f32 %v2908_v45  ;;  %v1508_v62 = vadd.f32 %v1476_v21, %v1406_v54  ;;  %v4564_v30 = vld [vmem:[#allocation2 + $0xb2] sm:$0xff] }
 0x17f   : > { %3117 = vmatprep.mubr.f32.mxu0 %v2309_v7  ;;  %v1477_v42 = vmul.f32 %v4130_v47, %v4473_v2  ;;  %v1913_v12 = vadd.f32 %v1881_v17, %v1812_v29  ;;  %v1306_v23 = vadd.f32 %v1274_v59, %v1173_v43  ;;  %v1678_v14 = vmul.f32 %v4171_v39, %v4457_v26  ;;  %v4587_v59 = vld [vmem:[#allocation2 + $0xc0] sm:$0xff] }
 0x180   : > { %3397 = vrcp.f32 %v2215_v20  ;;  %v4534_v13 = vadd.f32 %v4247_v27, %v2052_v46  ;;  %v3390_v18 = vpop.eup %3389  ;;  %v1609_v50 = vadd.f32 %v1577_v5, %v1508_v62  ;;  %v1781_v52 = vmul.f32 %v4183_v4, %v4523_v51  ;;  %v4581_v46 = vld [vmem:[%s5422_s4 + $0x9] ss:$0 sm:$0xff] }
 0x181   : > { %v1882_v8 = vmul.f32 %v4099_v24, %v4525_v28  ;;  %v2216_v11 = vadd.f32 1.0, %v3390_v18  ;;  %v2014_v1 = vadd.f32 %v1982_v36, %v1913_v12  ;;  %v1407_v48 = vadd.f32 %v1375_v22, %v1306_v23  ;;  %v4591_v23 = vld [vmem:[#allocation2 + $0xc1] sm:$0xff] }
 0x182   : > { %v2909_v37 = vmul.f32 -1.442695, %v4534_v13  ;;  %v1710_v0 = vadd.f32 %v1678_v14, %v1609_v50  ;;  %v1983_v3 = vmul.f32 %v4219_v38, %v4536_v31  ;;  %v1578_v33 = vmul.f32 %v4550_v56, %v4475_v44 }
 0x183   : > { %v3392_v40 = vpop.eup %3391  ;;  %v1174_v24 = vmul.f32 %v4482_v6, %v4451_v41  ;;  %3399 = vrcp.f32 %v2216_v11  ;;  %v2053_v17 = vmul.f32 %v4233_v49, %v2014_v1  ;;  %v1509_v19 = vadd.f32 %v1477_v42, %v1407_v48 }
 0x184   : > { %v2310_v55 = vmul.f32 %v3392_v40, %v4373_v25  ;;  %3401 = vpow2.f32 %v2909_v37  ;;  %v1813_v35 = vadd.f32 %v1781_v52, %v1710_v0  ;;  %v1679_v21 = vmul.f32 %v4171_v39, %v4489_v16 }
 0x185   : > { %v1275_v57 = vmul.f32 %v4494_v15, %v4455_v9  ;;  %v4569_v25 = vadd.f32 %v4247_v27, %v2053_v17  ;;  %v1610_v41 = vadd.f32 %v1578_v33, %v1509_v19  ;;  %v1782_v5 = vmul.f32 %v4183_v4, %v4554_v58 }
 0x186   : > { %v3394_v36 = vpop.eup %3393  ;;  %3118 = vmatmul.mubr.f32.gmra.mxu0 %v2310_v55  ;;  %v1376_v34 = vmul.f32 %v4508_v60, %v4457_v26  ;;  %v1914_v45 = vadd.f32 %v1882_v8, %v1813_v35  ;;  %v1478_v43 = vmul.f32 %v4130_v47, %v4523_v51  ;;  %v1883_v29 = vmul.f32 %v4581_v46, %v4562_v61 }
 0x187   : > { %v2217_v7 = vadd.f32 1.0, %v3394_v36  ;;  %v1307_v54 = vadd.f32 %v1275_v57, %v1174_v24  ;;  %v2910_v9 = vmul.f32 -1.442695, %v4569_v25  ;;  %v1711_v20 = vadd.f32 %v1679_v21, %v1610_v41  ;;  %v4618_v36 = vld [vmem:[#allocation2 + $0xc2] sm:$0xff] }
 0x188   : > { %v1984_v26 = vmul.f32 %v4219_v38, %v4564_v30  ;;  %v2015_v62 = vadd.f32 %v1983_v3, %v1914_v45  ;;  %v1579_v42 = vmul.f32 %v4550_v56, %v4525_v28  ;;  %v1175_v18 = vmul.f32 %v4482_v6, %v4473_v2 }
 0x189   : > { %3403 = vrcp.f32 %v2217_v7  ;;  %v1408_v22 = vadd.f32 %v1376_v34, %v1307_v54  ;;  %v1814_v12 = vadd.f32 %v1782_v5, %v1711_v20  ;;  %v1276_v50 = vmul.f32 %v4494_v15, %v4475_v44  ;;  %v4620_v5 = vld [vmem:[#allocation2 + $0xc8] sm:$0xff] }
 0x18a   : > { %3405 = vpow2.f32 %v2910_v9  ;;  %v2054_v14 = vmul.f32 %v4233_v49, %v2015_v62  ;;  %v1680_v8 = vmul.f32 %v4171_v39, %v4536_v31  ;;  %v1783_v11 = vmul.f32 %v4183_v4, %v4587_v59  ;;  %v4626_v54 = vld [vmem:[#allocation2 + $0xc9] sm:$0xff] }
 0x18b   : > { %v1510_v52 = vadd.f32 %v1478_v43, %v1408_v22  ;;  %v3396_v37 = vpop.eup %3395  ;;  %v1915_v1 = vadd.f32 %v1883_v29, %v1814_v12  ;;  %v1308_v48 = vadd.f32 %v1276_v50, %v1175_v18  ;;  %v1377_v40 = vmul.f32 %v4508_v60, %v4489_v16  ;;  %v4633_v43 = vld [vmem:[%s5422_s4 + $0x4] ss:$0 sm:$0xff] }
 0x18c   : > { %v1479_v2 = vmul.f32 %v4130_v47, %v4554_v58  ;;  %v2218_v44 = vadd.f32 1.0, %v3396_v37  ;;  %v4607_v3 = vadd.f32 %v4247_v27, %v2054_v14  ;;  %v1884_v24 = vmul.f32 %v4581_v46, %v4591_v23  ;;  %v4654_v37 = vld [vmem:[#allocation2 + $0xd8] sm:$0xff] }
 0x18d   : > { %v3398_v0 = vpop.eup %3397  ;;  %v1611_v33 = vadd.f32 %v1579_v42, %v1510_v52  ;;  %v2016_v17 = vadd.f32 %v1984_v26, %v1915_v1  ;;  %v1409_v19 = vadd.f32 %v1377_v40, %v1308_v48  ;;  %v1580_v35 = vmul.f32 %v4550_v56, %v4562_v61  ;;  %v4641_v26 = vld [vmem:[#allocation2 + $0xca] sm:$0xff] }
 0x18e   : > { %v2311_v55 = vmul.f32 %v3398_v0, %v4414_v32  ;;  %3407 = vrcp.f32 %v2218_v44  ;;  %v2911_v16 = vmul.f32 -1.442695, %v4607_v3  ;;  %v1681_v21 = vmul.f32 %v4171_v39, %v4564_v30 }
 0x18f   : > { %v1712_v47 = vadd.f32 %v1680_v8, %v1611_v33  ;;  %v2055_v57 = vmul.f32 %v4233_v49, %v2016_v17  ;;  %v1511_v41 = vadd.f32 %v1479_v2, %v1409_v19  ;;  %v1176_v32 = vmul.f32 %v4482_v6, %v4523_v51  ;;  %v4663_v33 = vld [vmem:[%s5422_s4 + $0x6] ss:$0 sm:$0xff] }
 0x190   : > { %3120 = vmatprep.mubr.f32.mxu0 %v2311_v55  ;;  %v1277_v34 = vmul.f32 %v4494_v15, %v4525_v28  ;;  %v3400_v7 = vpop.eup %3399  ;;  %3409 = vpow2.f32 %v2911_v16  ;;  %v1378_v39 = vmul.f32 %v4508_v60, %v4536_v31  ;;  %v1480_v9 = vmul.f32 %v4633_v43, %v4587_v59  ;;  %v4667_v55 = vld [vmem:[#allocation2 + $0xd9] sm:$0xff] }
 0x191   : > { %v1815_v45 = vadd.f32 %v1783_v11, %v1712_v47  ;;  %v3402_v51 = vpop.eup %3401  ;;  %v2312_v20 = vmul.f32 %v3400_v7, %v4435_v10  ;;  %v4639_v28 = vadd.f32 %v4247_v27, %v2055_v57  ;;  %v1612_v29 = vadd.f32 %v1580_v35, %v1511_v41  ;;  %v4678_v47 = vld [vmem:[#allocation2 + $0xda] sm:$0xff] }
 0x192   : > { %v1309_v62 = vadd.f32 %v1277_v34, %v1176_v32  ;;  %v2219_v22 = vadd.f32 1.0, %v3402_v51  ;;  %v1985_v42 = vmul.f32 %v4219_v38, %v4618_v36  ;;  %v1784_v12 = vmul.f32 %v4183_v4, %v4620_v5 }
 0x193   : > { %v1916_v31 = vadd.f32 %v1884_v24, %v1815_v45  ;;  %3121 = vmatmul.mubr.f32.gmra.mxu0 %v2312_v20  ;;  %v2912_v18 = vmul.f32 -1.442695, %v4639_v28  ;;  %v1713_v50 = vadd.f32 %v1681_v21, %v1612_v29  ;;  %v1885_v10 = vmul.f32 %v4581_v46, %v4626_v54 }
 0x194   : > { %v1410_v14 = vadd.f32 %v1378_v39, %v1309_v62  ;;  %3411 = vrcp.f32 %v2219_v22  ;;  %v1986_v8 = vmul.f32 %v4219_v38, %v4641_v26  ;;  %v1581_v11 = vmul.f32 %v4550_v56, %v4591_v23  ;;  %v4695_v62 = vld [vmem:[#allocation2 + $0xe0] sm:$0xff] }
 0x195   : > { %v2017_v52 = vadd.f32 %v1985_v42, %v1916_v31  ;;  %3413 = vpow2.f32 %v2912_v18  ;;  %v1816_v4 = vadd.f32 %v1784_v12, %v1713_v50  ;;  %v1177_v40 = vmul.f32 %v4482_v6, %v4554_v58  ;;  %v4702_v12 = vld [vmem:[#allocation2 + $0xe1] sm:$0xff] }
 0x196   : > { %v3404_v1 = vpop.eup %3403  ;;  %v1512_v48 = vadd.f32 %v1480_v9, %v1410_v14  ;;  %v1682_v24 = vmul.f32 %v4663_v33, %v4618_v36  ;;  %v1278_v17 = vmul.f32 %v4494_v15, %v4562_v61  ;;  %v1379_v61 = vmul.f32 %v4508_v60, %v4564_v30 }
 0x197   : > { %v3406_v2 = vpop.eup %3405  ;;  %v2313_v0 = vmul.f32 %v3404_v1, %v4460_v63  ;;  %v2056_v44 = vmul.f32 %v4233_v49, %v2017_v52  ;;  %v1917_v58 = vadd.f32 %v1885_v10, %v1816_v4  ;;  %v4674_v63 = vld [vmem:[%s5422_s4 + $0x8] ss:$0 sm:$0xff]  ;;  %v1481_v41 = vmul.f32 %v4633_v43, %v4620_v5 }
 0x198   : > { %v2220_v19 = vadd.f32 1.0, %v3406_v2  ;;  %v1613_v35 = vadd.f32 %v1581_v11, %v1512_v48  ;;  %v1785_v16 = vmul.f32 %v4674_v63, %v4654_v37  ;;  %v1310_v57 = vadd.f32 %v1278_v17, %v1177_v40  ;;  %v4709_v52 = vld [vmem:[#allocation2 + $0xe2] sm:$0xff]  ;;  %v4729_v17 = vld [vmem:[#allocation2 + $0xf0] sm:$0xff] }
 0x199   : > { %3123 = vmatprep.mubr.f32.mxu1 %v2313_v0  ;;  %v4681_v21 = vadd.f32 %v4247_v27, %v2056_v44  ;;  %v2018_v32 = vadd.f32 %v1986_v8, %v1917_v58  ;;  %v1886_v7 = vmul.f32 %v4581_v46, %v4667_v55  ;;  %v1987_v39 = vmul.f32 %v4219_v38, %v4678_v47  ;;  %v4723_v0 = vld [vmem:[%s5422_s4 + $0xa] ss:$0 sm:$0xff] }
 0x19a   : > { %3415 = vrcp.f32 %v2220_v19  ;;  %v1714_v34 = vadd.f32 %v1682_v24, %v1613_v35  ;;  %v1411_v9 = vadd.f32 %v1379_v61, %v1310_v57  ;;  %v1582_v51 = vmul.f32 %v4550_v56, %v4626_v54 }
 0x19b   : > { %v2913_v45 = vmul.f32 -1.442695, %v4681_v21  ;;  %v3408_v20 = vpop.eup %3407  ;;  %v2057_v30 = vmul.f32 %v4233_v49, %v2018_v32  ;;  %v1178_v22 = vmul.f32 %v4482_v6, %v4587_v59  ;;  %v1279_v31 = vmul.f32 %v4494_v15, %v4591_v23 }
 0x19c   : > { %v1817_v29 = vadd.f32 %v1785_v16, %v1714_v34  ;;  %v2314_v42 = vmul.f32 %v3408_v20, %v4503_v53  ;;  %v1513_v38 = vadd.f32 %v1481_v41, %v1411_v9  ;;  %v1380_v18 = vmul.f32 %v4508_v60, %v4618_v36  ;;  %v4737_v34 = vld [vmem:[#allocation2 + $0xf1] sm:$0xff] }
 0x19d   : > { %3417 = vpow2.f32 %v2913_v45  ;;  %v3410_v50 = vpop.eup %3409  ;;  %v4707_v10 = vadd.f32 %v4247_v27, %v2057_v30  ;;  %v1311_v59 = vadd.f32 %v1279_v31, %v1178_v22  ;;  %v1482_v23 = vmul.f32 %v4633_v43, %v4654_v37  ;;  %v4746_v9 = vld [vmem:[#allocation2 + $0xf2] sm:$0xff] }
 0x19e   : > { %v1918_v14 = vadd.f32 %v1886_v7, %v1817_v29  ;;  %3124 = vmatmul.mubr.f32.vlgmr.msra.gmra.mxu1 %v2314_v42  ;;  %v2221_v53 = vadd.f32 1.0, %v3410_v50  ;;  %v1614_v8 = vadd.f32 %v1582_v51, %v1513_v38  ;;  %v1683_v11 = vmul.f32 %v4663_v33, %v4641_v26 }
 0x19f   : > { %v1786_v36 = vmul.f32 %v4674_v63, %v4695_v62  ;;  %v2914_v1 = vmul.f32 -1.442695, %v4707_v10  ;;  %v1887_v48 = vmul.f32 %v4581_v46, %v4702_v12  ;;  %v1412_v40 = vadd.f32 %v1380_v18, %v1311_v59 }
 0x1a0   : > { %v2019_v4 = vadd.f32 %v1987_v39, %v1918_v14  ;;  %3419 = vrcp.f32 %v2221_v53  ;;  %v1715_v2 = vadd.f32 %v1683_v11, %v1614_v8  ;;  %v1988_v44 = vmul.f32 %v4723_v0, %v4709_v52 }
 0x1a1   : > { %v1583_v24 = vmul.f32 %v4550_v56, %v4667_v55  ;;  %v3412_v19 = vpop.eup %3411  ;;  %3421 = vpow2.f32 %v2914_v1  ;;  %v1514_v35 = vadd.f32 %v1482_v23, %v1412_v40  ;;  %v1179_v16 = vmul.f32 %v4482_v6, %v4620_v5  ;;  %v4767_v23 = vld [vmem:[%s5423_s5] ss:$0 sm:$0xff] }
 0x1a2   : > { %v2058_v58 = vmul.f32 %v4233_v49, %v2019_v4  ;;  %v3414_v57 = vpop.eup %3413  ;;  %v2315_v61 = vmul.f32 %v3412_v19, %v4534_v13  ;;  %v1818_v41 = vadd.f32 %v1786_v36, %v1715_v2  ;;  %v1684_v32 = vmul.f32 %v4663_v33, %v4678_v47  ;;  %v4772_v36 = vld [vmem:[#allocation2 + $0xf9] sm:$0xff] }
 0x1a3   : > { %v1280_v7 = vmul.f32 %v4494_v15, %v4626_v54  ;;  %v2222_v45 = vadd.f32 1.0, %v3414_v57  ;;  %v1615_v49 = vadd.f32 %v1583_v24, %v1514_v35  ;;  %v1787_v5 = vmul.f32 %v4674_v63, %v4729_v17  ;;  %v4774_v1 = vld [vmem:[#allocation2 + $0xfa] sm:$0xff] }
 0x1a4   : > { %v4742_v39 = vadd.f32 %v4247_v27, %v2058_v58  ;;  %3126 = vmatprep.mubr.f32.mxu1 %v2315_v61  ;;  %v1919_v13 = vadd.f32 %v1887_v48, %v1818_v41  ;;  %v1381_v20 = vmul.f32 %v4508_v60, %v4641_v26  ;;  %v1483_v30 = vmul.f32 %v4633_v43, %v4695_v62  ;;  %v4759_v26 = vld [vmem:[#allocation2 + $0xf8] sm:$0xff]  ;;  %v4787_v24 = vld [vmem:[%s5424_s6] ss:$0 sm:$0xff] }
 0x1a5   : > { %v1312_v51 = vadd.f32 %v1280_v7, %v1179_v16  ;;  %3423 = vrcp.f32 %v2222_v45  ;;  %v1716_v27 = vadd.f32 %v1684_v32, %v1615_v49  ;;  %v1888_v29 = vmul.f32 %v4581_v46, %v4737_v34  ;;  %v4800_v49 = vld [vmem:[#allocation2 + $0x108] sm:$0xff] }
 0x1a6   : > { %v2915_v54 = vmul.f32 -1.442695, %v4742_v39  ;;  %v2020_v31 = vadd.f32 %v1988_v44, %v1919_v13  ;;  %v1989_v42 = vmul.f32 %v4723_v0, %v4746_v9  ;;  %v1584_v18 = vmul.f32 %v4550_v56, %v4702_v12 }
 0x1a7   : > { %v3416_v22 = vpop.eup %3415  ;;  %v1413_v38 = vadd.f32 %v1381_v20, %v1312_v51  ;;  %v1819_v14 = vadd.f32 %v1787_v5, %v1716_v27  ;;  %v1180_v59 = vmul.f32 %v4482_v6, %v4654_v37  ;;  %v1685_v11 = vmul.f32 %v4663_v33, %v4709_v52 }
 0x1a8   : > { %v2316_v50 = vmul.f32 %v3416_v22, %v4569_v25  ;;  %3425 = vpow2.f32 %v2915_v54  ;;  %v2059_v53 = vmul.f32 %v4767_v23, %v2020_v31  ;;  %v1281_v25 = vmul.f32 %v4494_v15, %v4667_v55 }
 0x1a9   : > { %v1515_v8 = vadd.f32 %v1483_v30, %v1413_v38  ;;  %v1920_v37 = vadd.f32 %v1888_v29, %v1819_v14  ;;  %v1788_v48 = vmul.f32 %v4674_v63, %v4759_v26  ;;  %v1382_v40 = vmul.f32 %v4508_v60, %v4678_v47  ;;  %v4809_v29 = vld [vmem:[#allocation2 + $0x109] sm:$0xff] }
 0x1aa   : > { %v3418_v4 = vpop.eup %3417  ;;  %3127 = vmatmul.mubr.f32.gmra.mxu1 %v2316_v50  ;;  %v1484_v2 = vmul.f32 %v4633_v43, %v4729_v17  ;;  %v4790_v55 = vadd.f32 %v4787_v24, %v2059_v53  ;;  %v1313_v58 = vadd.f32 %v1281_v25, %v1180_v59  ;;  %v1889_v16 = vmul.f32 %v4581_v46, %v4772_v36 }
 0x1ab   : > { %v2223_v44 = vadd.f32 1.0, %v3418_v4  ;;  %v1616_v19 = vadd.f32 %v1584_v18, %v1515_v8  ;;  %v2021_v35 = vadd.f32 %v1989_v42, %v1920_v37  ;;  %v1990_v47 = vmul.f32 %v4723_v0, %v4774_v1  ;;  %v4814_v42 = vld [vmem:[#allocation2 + $0x10a] sm:$0xff] }
 0x1ac   : > { %v1585_v57 = vmul.f32 %v4550_v56, %v4737_v34  ;;  %v2916_v61 = vmul.f32 -1.442695, %v4790_v55  ;;  %v1414_v32 = vadd.f32 %v1382_v40, %v1313_v58  ;;  %v1181_v5 = vmul.f32 %v4482_v6, %v4695_v62  ;;  %v4829_v37 = vld [vmem:[#allocation2 + $0x110] sm:$0xff] }
 0x1ad   : > { %3427 = vrcp.f32 %v2223_v44  ;;  %v1717_v41 = vadd.f32 %v1685_v11, %v1616_v19  ;;  %v3420_v7 = vpop.eup %3419  ;;  %v2060_v45 = vmul.f32 %v4767_v23, %v2021_v35  ;;  %v1282_v13 = vmul.f32 %v4494_v15, %v4702_v12 }
 0x1ae   : > { %v1383_v51 = vmul.f32 %v4508_v60, %v4709_v52  ;;  %v3422_v20 = vpop.eup %3421  ;;  %v2317_v30 = vmul.f32 %v3420_v7, %v4607_v3  ;;  %3429 = vpow2.f32 %v2916_v61  ;;  %v1516_v27 = vadd.f32 %v1484_v2, %v1414_v32 }
 0x1af   : > { %v1820_v54 = vadd.f32 %v1788_v48, %v1717_v41  ;;  %v2224_v22 = vadd.f32 1.0, %v3422_v20  ;;  %v4812_v31 = vadd.f32 %v4787_v24, %v2060_v45  ;;  %v1314_v62 = vadd.f32 %v1282_v13, %v1181_v5 }
 0x1b0   : > { %v1485_v12 = vmul.f32 %v4633_v43, %v4759_v26  ;;  %3129 = vmatprep.mubr.f32.mxu1 %v2317_v30  ;;  %v1617_v38 = vadd.f32 %v1585_v57, %v1516_v27  ;;  %v1686_v3 = vmul.f32 %v4663_v33, %v4746_v9  ;;  %v1789_v18 = vmul.f32 %v4674_v63, %v4800_v49 }
 0x1b1   : > { %v1921_v52 = vadd.f32 %v1889_v16, %v1820_v54  ;;  %3431 = vrcp.f32 %v2224_v22  ;;  %v2917_v50 = vmul.f32 -1.442695, %v4812_v31  ;;  %v1890_v14 = vmul.f32 %v4581_v46, %v4809_v29  ;;  %v4837_v16 = vld [vmem:[#allocation2 + $0x111] sm:$0xff] }
 0x1b2   : > { %v1415_v59 = vadd.f32 %v1383_v51, %v1314_v62  ;;  %v3424_v53 = vpop.eup %3423  ;;  %v1718_v11 = vadd.f32 %v1686_v3, %v1617_v38  ;;  %v1991_v25 = vmul.f32 %v4723_v0, %v4814_v42  ;;  %v1586_v4 = vmul.f32 %v4550_v56, %v4772_v36 }
 0x1b3   : > { %v2022_v8 = vadd.f32 %v1990_v47, %v1921_v52  ;;  %v2318_v48 = vmul.f32 %v3424_v53, %v4639_v28  ;;  %3433 = vpow2.f32 %v2917_v50  ;;  %v1182_v2 = vmul.f32 %v4482_v6, %v4729_v17  ;;  %v4839_v47 = vld [vmem:[#allocation2 + $0x112] sm:$0xff] }
 0x1b4   : > { %v1517_v40 = vadd.f32 %v1485_v12, %v1415_v59  ;;  %v1821_v58 = vadd.f32 %v1789_v18, %v1718_v11  ;;  %v1687_v35 = vmul.f32 %v4663_v33, %v4774_v1  ;;  %v1283_v57 = vmul.f32 %v4494_v15, %v4737_v34  ;;  %v4861_v12 = vld [vmem:[#allocation2 + $0x120] sm:$0xff] }
 0x1b5   : > { %v3426_v44 = vpop.eup %3425  ;;  %v2061_v19 = vmul.f32 %v4767_v23, %v2022_v8  ;;  %3130 = vmatmul.mubr.f32.gmra.mxu1 %v2318_v48  ;;  %v1790_v17 = vmul.f32 %v4674_v63, %v4829_v37  ;;  %v1384_v41 = vmul.f32 %v4508_v60, %v4746_v9  ;;  %v1486_v5 = vmul.f32 %v4633_v43, %v4800_v49  ;;  %v4871_v59 = vld [vmem:[#allocation2 + $0x122] sm:$0xff] }
 0x1b6   : > { %v2225_v28 = vadd.f32 1.0, %v3426_v44  ;;  %v1618_v61 = vadd.f32 %v1586_v4, %v1517_v40  ;;  %v1922_v7 = vadd.f32 %v1890_v14, %v1821_v58  ;;  %v1315_v45 = vadd.f32 %v1283_v57, %v1182_v2  ;;  %v4869_v14 = vld [vmem:[#allocation2 + $0x121] sm:$0xff] }
 0x1b7   : > { %v4848_v32 = vadd.f32 %v4787_v24, %v2061_v19  ;;  %v1891_v34 = vmul.f32 %v4581_v46, %v4837_v16  ;;  %v1992_v51 = vmul.f32 %v4723_v0, %v4839_v47  ;;  %v1587_v54 = vmul.f32 %v4550_v56, %v4809_v29 }
 0x1b8   : > { %3435 = vrcp.f32 %v2225_v28  ;;  %v1719_v13 = vadd.f32 %v1687_v35, %v1618_v61  ;;  %v2023_v30 = vadd.f32 %v1991_v25, %v1922_v7  ;;  %v1416_v9 = vadd.f32 %v1384_v41, %v1315_v45  ;;  %v4889_v28 = vld [vmem:[#allocation2 + $0x128] sm:$0xff] }
 0x1b9   : > { %v2918_v20 = vmul.f32 -1.442695, %v4848_v32  ;;  %v1688_v62 = vmul.f32 %v4663_v33, %v4814_v42  ;;  %v1183_v52 = vmul.f32 %v4482_v6, %v4759_v26  ;;  %v1284_v38 = vmul.f32 %v4494_v15, %v4772_v36 }
 0x1ba   : > { %v3428_v27 = vpop.eup %3427  ;;  %v1822_v22 = vadd.f32 %v1790_v17, %v1719_v13  ;;  %v2062_v18 = vmul.f32 %v4767_v23, %v2023_v30  ;;  %v1518_v50 = vadd.f32 %v1486_v5, %v1416_v9  ;;  %v1385_v25 = vmul.f32 %v4508_v60, %v4774_v1  ;;  %v4906_v9 = vld [vmem:[#allocation2 + $0x12a] sm:$0xff] }
 0x1bb   : > { %v2319_v3 = vmul.f32 %v3428_v27, %v4681_v21  ;;  %3437 = vpow2.f32 %v2918_v20  ;;  %v3430_v53 = vpop.eup %3429  ;;  %v1316_v11 = vadd.f32 %v1284_v38, %v1183_v52  ;;  %v1487_v26 = vmul.f32 %v4633_v43, %v4829_v37 }
 0x1bc   : > { %v1923_v8 = vadd.f32 %v1891_v34, %v1822_v22  ;;  %v2226_v36 = vadd.f32 1.0, %v3430_v53  ;;  %v4878_v21 = vadd.f32 %v4787_v24, %v2062_v18  ;;  %v1619_v4 = vadd.f32 %v1587_v54, %v1518_v50  ;;  %v4897_v34 = vld [vmem:[#allocation2 + $0x129] sm:$0xff] }
 0x1bd   : > { %3132 = vmatprep.mubr.f32.mxu1 %v2319_v3  ;;  %v1791_v48 = vmul.f32 %v4674_v63, %v4861_v12  ;;  %v1892_v2 = vmul.f32 %v4581_v46, %v4869_v14  ;;  %v1993_v44 = vmul.f32 %v4723_v0, %v4871_v59  ;;  %v1417_v1 = vadd.f32 %v1385_v25, %v1316_v11 }
 0x1be   : > { %v2024_v40 = vadd.f32 %v1992_v51, %v1923_v8  ;;  %v3432_v19 = vpop.eup %3431  ;;  %3439 = vrcp.f32 %v2226_v36  ;;  %v2919_v58 = vmul.f32 -1.442695, %v4878_v21  ;;  %v1720_v35 = vadd.f32 %v1688_v62, %v1619_v4 }
 0x1bf   : > { %v1588_v57 = vmul.f32 %v4550_v56, %v4837_v16  ;;  %v2320_v61 = vmul.f32 %v3432_v19, %v4707_v10  ;;  %v1519_v41 = vadd.f32 %v1487_v26, %v1417_v1  ;;  %v1184_v7 = vmul.f32 %v4482_v6, %v4800_v49 }
 0x1c0   : > { %v2063_v17 = vmul.f32 %v4767_v23, %v2024_v40  ;;  %v3434_v45 = vpop.eup %3433  ;;  %3441 = vpow2.f32 %v2919_v58  ;;  %v1823_v5 = vadd.f32 %v1791_v48, %v1720_v35  ;;  %v1689_v13 = vmul.f32 %v4663_v33, %v4839_v47  ;;  %v4927_v40 = vld [vmem:[#allocation2 + $0x139] sm:$0xff] }
 0x1c1   : > { %v1285_v51 = vmul.f32 %v4494_v15, %v4809_v29  ;;  %3133 = vmatmul.mubr.f32.gmra.mxu1 %v2320_v61  ;;  %v2227_v20 = vadd.f32 1.0, %v3434_v45  ;;  %v1620_v30 = vadd.f32 %v1588_v57, %v1519_v41  ;;  %v1792_v49 = vmul.f32 %v4674_v63, %v4889_v28 }
 0x1c2   : > { %v4902_v10 = vadd.f32 %v4787_v24, %v2063_v17  ;;  %v1924_v54 = vadd.f32 %v1892_v2, %v1823_v5  ;;  %v1386_v22 = vmul.f32 %v4508_v60, %v4814_v42  ;;  %v1488_v62 = vmul.f32 %v4633_v43, %v4861_v12  ;;  %v4919_v42 = vld [vmem:[#allocation2 + $0x138] sm:$0xff] }
 0x1c3   : > { %v1317_v27 = vadd.f32 %v1285_v51, %v1184_v7  ;;  %3443 = vrcp.f32 %v2227_v20  ;;  %v1721_v52 = vadd.f32 %v1689_v13, %v1620_v30  ;;  %v1893_v38 = vmul.f32 %v4581_v46, %v4897_v34  ;;  %v4929_v2 = vld [vmem:[#allocation2 + $0x13a] sm:$0xff] }
 0x1c4   : > { %v2920_v29 = vmul.f32 -1.442695, %v4902_v10  ;;  %v2025_v18 = vadd.f32 %v1993_v44, %v1924_v54  ;;  %v1994_v50 = vmul.f32 %v4723_v0, %v4906_v9  ;;  %v1589_v8 = vmul.f32 %v4550_v56, %v4869_v14 }
 0x1c5   : > { %v3436_v3 = vpop.eup %3435  ;;  %v1418_v53 = vadd.f32 %v1386_v22, %v1317_v27  ;;  %v1824_v25 = vadd.f32 %v1792_v49, %v1721_v52  ;;  %v1185_v26 = vmul.f32 %v4482_v6, %v4829_v37  ;;  %v1690_v48 = vmul.f32 %v4663_v33, %v4871_v59  ;;  %v4952_v49 = vld [vmem:[#allocation2 + $0x140] sm:$0xff] }
 0x1c6   : > { %v2321_v11 = vmul.f32 %v3436_v3, %v4742_v39  ;;  %3445 = vpow2.f32 %v2920_v29  ;;  %v2064_v36 = vmul.f32 %v4767_v23, %v2025_v18  ;;  %v1286_v44 = vmul.f32 %v4494_v15, %v4837_v16  ;;  %v4959_v52 = vld [vmem:[#allocation2 + $0x141] sm:$0xff] }
 0x1c7   : > { %v1520_v4 = vadd.f32 %v1488_v62, %v1418_v53  ;;  %v1925_v39 = vadd.f32 %v1893_v38, %v1824_v25  ;;  %v1793_v19 = vmul.f32 %v4674_v63, %v4919_v42  ;;  %v1387_v37 = vmul.f32 %v4508_v60, %v4839_v47  ;;  %v4961_v38 = vld [vmem:[#allocation2 + $0x142] sm:$0xff] }
 0x1c8   : > { %v3438_v1 = vpop.eup %3437  ;;  %3135 = vmatprep.mubr.f32.mxu1 %v2321_v11  ;;  %v1489_v58 = vmul.f32 %v4633_v43, %v4889_v28  ;;  %v4940_v57 = vadd.f32 %v4787_v24, %v2064_v36  ;;  %v1318_v17 = vadd.f32 %v1286_v44, %v1185_v26  ;;  %v1894_v16 = vmul.f32 %v4581_v46, %v4927_v40 }
 0x1c9   : > { %v2228_v35 = vadd.f32 1.0, %v3438_v1  ;;  %v1621_v61 = vadd.f32 %v1589_v8, %v1520_v4  ;;  %v2026_v41 = vadd.f32 %v1994_v50, %v1925_v39  ;;  %v1995_v7 = vmul.f32 %v4723_v0, %v4929_v2  ;;  %v4979_v39 = vld [vmem:[#allocation2 + $0x150] sm:$0xff] }
 0x1ca   : > { %v1590_v45 = vmul.f32 %v4550_v56, %v4897_v34  ;;  %v2921_v47 = vmul.f32 -1.442695, %v4940_v57  ;;  %v1419_v13 = vadd.f32 %v1387_v37, %v1318_v17  ;;  %v1691_v30 = vmul.f32 %v4663_v33, %v4906_v9 }
 0x1cb   : > { %3447 = vrcp.f32 %v2228_v35  ;;  %v1722_v5 = vadd.f32 %v1690_v48, %v1621_v61  ;;  %v3440_v51 = vpop.eup %3439  ;;  %v2065_v20 = vmul.f32 %v4767_v23, %v2026_v41  ;;  %v1186_v54 = vmul.f32 %v4482_v6, %v4861_v12 }
 0x1cc   : > { %v1287_v27 = vmul.f32 %v4494_v15, %v4869_v14  ;;  %v2322_v22 = vmul.f32 %v3440_v51, %v4790_v55  ;;  %3449 = vpow2.f32 %v2921_v47  ;;  %v1521_v29 = vadd.f32 %v1489_v58, %v1419_v13 }
 0x1cd   : > { %v1825_v62 = vadd.f32 %v1793_v19, %v1722_v5  ;;  %v3442_v3 = vpop.eup %3441  ;;  %v4964_v18 = vadd.f32 %v4787_v24, %v2065_v20  ;;  %v1388_v12 = vmul.f32 %v4508_v60, %v4871_v59  ;;  %v1490_v14 = vmul.f32 %v4633_v43, %v4919_v42 }
 0x1ce   : > { %v1319_v50 = vadd.f32 %v1287_v27, %v1186_v54  ;;  %3136 = vmatmul.mubr.f32.gmra.mxu1 %v2322_v22  ;;  %v2229_v55 = vadd.f32 1.0, %v3442_v3  ;;  %v1622_v8 = vadd.f32 %v1590_v45, %v1521_v29  ;;  %v1794_v11 = vmul.f32 %v4674_v63, %v4952_v49 }
 0x1cf   : > { %v1926_v53 = vadd.f32 %v1894_v16, %v1825_v62  ;;  %v2922_v25 = vmul.f32 -1.442695, %v4964_v18  ;;  %v1895_v26 = vmul.f32 %v4581_v46, %v4959_v52  ;;  %v1996_v36 = vmul.f32 %v4723_v0, %v4961_v38  ;;  %v4987_v16 = vld [vmem:[#allocation2 + $0x151] sm:$0xff] }
 0x1d0   : > { %v1420_v4 = vadd.f32 %v1388_v12, %v1319_v50  ;;  %v3444_v59 = vpop.eup %3443  ;;  %3451 = vrcp.f32 %v2229_v55  ;;  %v1723_v44 = vadd.f32 %v1691_v30, %v1622_v8  ;;  %v1591_v1 = vmul.f32 %v4550_v56, %v4927_v40 }
 0x1d1   : > { %v2027_v48 = vadd.f32 %v1995_v7, %v1926_v53  ;;  %v2323_v19 = vmul.f32 %v3444_v59, %v4812_v31  ;;  %3453 = vpow2.f32 %v2922_v25  ;;  %v1187_v58 = vmul.f32 %v4482_v6, %v4889_v28  ;;  %v4989_v7 = vld [vmem:[#allocation2 + $0x152] sm:$0xff] }
 0x1d2   : > { %v1522_v37 = vadd.f32 %v1490_v14, %v1420_v4  ;;  %v1826_v17 = vadd.f32 %v1794_v11, %v1723_v44  ;;  %v1692_v41 = vmul.f32 %v4663_v33, %v4929_v2  ;;  %v1288_v45 = vmul.f32 %v4494_v15, %v4897_v34  ;;  %v5011_v14 = vld [vmem:[#allocation2 + $0x158] sm:$0xff] }
 0x1d3   : > { %v3446_v35 = vpop.eup %3445  ;;  %v2066_v61 = vmul.f32 %v4767_v23, %v2027_v48  ;;  %3138 = vmatprep.mubr.f32.mxu1 %v2323_v19  ;;  %v1795_v28 = vmul.f32 %v4674_v63, %v4979_v39  ;;  %v1389_v5 = vmul.f32 %v4508_v60, %v4906_v9  ;;  %v1491_v30 = vmul.f32 %v4633_v43, %v4952_v49 }
 0x1d4   : > { %v2230_v31 = vadd.f32 1.0, %v3446_v35  ;;  %v1623_v47 = vadd.f32 %v1591_v1, %v1522_v37  ;;  %v1927_v51 = vadd.f32 %v1895_v26, %v1826_v17  ;;  %v1320_v20 = vadd.f32 %v1288_v45, %v1187_v58  ;;  %v5019_v26 = vld [vmem:[#allocation2 + $0x159] sm:$0xff] }
 0x1d5   : > { %v4998_v13 = vadd.f32 %v4787_v24, %v2066_v61  ;;  %v1896_v34 = vmul.f32 %v4581_v46, %v4987_v16  ;;  %v1997_v27 = vmul.f32 %v4723_v0, %v4989_v7  ;;  %v1592_v29 = vmul.f32 %v4550_v56, %v4959_v52 }
 0x1d6   : > { %3455 = vrcp.f32 %v2230_v31  ;;  %v1724_v54 = vadd.f32 %v1692_v41, %v1623_v47  ;;  %v2028_v62 = vadd.f32 %v1996_v36, %v1927_v51  ;;  %v1421_v9 = vadd.f32 %v1389_v5, %v1320_v20  ;;  %v5038_v31 = vld [vmem:[#allocation2 + $0x15a] sm:$0xff] }
 0x1d7   : > { %v2923_v22 = vmul.f32 -1.442695, %v4998_v13  ;;  %v1693_v12 = vmul.f32 %v4663_v33, %v4961_v38  ;;  %v1188_v55 = vmul.f32 %v4482_v6, %v4919_v42  ;;  %v1289_v53 = vmul.f32 %v4494_v15, %v4927_v40 }
 0x1d8   : > { %v3448_v3 = vpop.eup %3447  ;;  %v1827_v50 = vadd.f32 %v1795_v28, %v1724_v54  ;;  %v2067_v11 = vmul.f32 %v4767_v23, %v2028_v62  ;;  %v1523_v25 = vadd.f32 %v1491_v30, %v1421_v9  ;;  %v1390_v48 = vmul.f32 %v4508_v60, %v4929_v2  ;;  %v5040_v28 = vld [vmem:[#allocation2 + $0x168] sm:$0xff] }
 0x1d9   : > { %v2324_v8 = vmul.f32 %v3448_v3, %v4848_v32  ;;  %3457 = vpow2.f32 %v2923_v22  ;;  %v3450_v36 = vpop.eup %3449  ;;  %v1321_v59 = vadd.f32 %v1289_v53, %v1188_v55  ;;  %v1492_v42 = vmul.f32 %v4633_v43, %v4979_v39  ;;  %v5052_v9 = vld [vmem:[#allocation2 + $0x169] sm:$0xff] }
 0x1da   : > { %v1928_v4 = vadd.f32 %v1896_v34, %v1827_v50  ;;  %v2231_v44 = vadd.f32 1.0, %v3450_v36  ;;  %v5026_v40 = vadd.f32 %v4787_v24, %v2067_v11  ;;  %v1624_v32 = vadd.f32 %v1592_v29, %v1523_v25  ;;  %v5054_v29 = vld [vmem:[#allocation2 + $0x16a] sm:$0xff] }
 0x1db   : > { %3139 = vmatmul.mubr.f32.gmra.mxu1 %v2324_v8  ;;  %v1796_v1 = vmul.f32 %v4674_v63, %v5011_v14  ;;  %v1897_v37 = vmul.f32 %v4581_v46, %v5019_v26  ;;  %v1422_v58 = vadd.f32 %v1390_v48, %v1321_v59  ;;  %v1593_v2 = vmul.f32 %v4550_v56, %v4987_v16  ;;  %v5069_v11 = vld [vmem:[#allocation2 + $0x170] sm:$0xff] }
 0x1dc   : > { %v2029_v19 = vadd.f32 %v1997_v27, %v1928_v4  ;;  %3459 = vrcp.f32 %v2231_v44  ;;  %v2924_v35 = vmul.f32 -1.442695, %v5026_v40  ;;  %v1725_v61 = vadd.f32 %v1693_v12, %v1624_v32  ;;  %v5077_v44 = vld [vmem:[#allocation2 + $0x172] sm:$0xff]  ;;  %v5082_v32 = vld [vmem:[%s5422_s4] ss:$0 sm:$0xff] }
 0x1dd   : > { %v1694_v17 = vmul.f32 %v4663_v33, %v4989_v7  ;;  %v3452_v41 = vpop.eup %3451  ;;  %v1524_v47 = vadd.f32 %v1492_v42, %v1422_v58  ;;  %v1189_v5 = vmul.f32 %v4482_v6, %v4952_v49  ;;  %v1290_v51 = vmul.f32 %v4494_v15, %v4959_v52  ;;  %v5075_v42 = vld [vmem:[#allocation2 + $0x171] sm:$0xff] }
 0x1de   : > { %v2068_v45 = vmul.f32 %v4767_v23, %v2029_v19  ;;  %v3454_v20 = vpop.eup %3453  ;;  %v2325_v30 = vmul.f32 %v3452_v41, %v4878_v21  ;;  %3461 = vpow2.f32 %v2924_v35  ;;  %v1828_v54 = vadd.f32 %v1796_v1, %v1725_v61  ;;  %v5089_v1 = vld [vmem:[%s5422_s4 + $0x1] ss:$0 sm:$0xff]  ;;  %v5098_v61 = vld [vmem:[%s5422_s4 + $0x2] ss:$0 sm:$0xff] }
 0x1df   : > { %v1391_v34 = vmul.f32 %v4508_v60, %v4961_v38  ;;  %v2232_v27 = vadd.f32 1.0, %v3454_v20  ;;  %v1625_v62 = vadd.f32 %v1593_v2, %v1524_v47  ;;  %v1322_v6 = vadd.f32 %v1290_v51, %v1189_v5 }
 0x1e0   : > { %v5050_v22 = vadd.f32 %v4787_v24, %v2068_v45  ;;  %3141 = vmatprep.mubr.f32.mxu1 %v2325_v30  ;;  %v1929_v15 = vadd.f32 %v1897_v37, %v1828_v54  ;;  %v1998_v21 = vmul.f32 %v4723_v0, %v5038_v31  ;;  %v1797_v49 = vmul.f32 %v4674_v63, %v5040_v28 }
 0x1e1   : > { %v1493_v60 = vmul.f32 %v4633_v43, %v5011_v14  ;;  %3463 = vrcp.f32 %v2232_v27  ;;  %v1726_v38 = vadd.f32 %v1694_v17, %v1625_v62  ;;  %v1423_v3 = vadd.f32 %v1391_v34, %v1322_v6  ;;  %v1763_v6 = vld [vmem:[#allocation2 + $0x180] sm:$0xff] }
 0x1e2   : > { %v2925_v52 = vmul.f32 -1.442695, %v5050_v22  ;;  %v2030_v12 = vadd.f32 %v1998_v21, %v1929_v15  ;;  %v1898_v55 = vmul.f32 %v4581_v46, %v5052_v9  ;;  %v1999_v53 = vmul.f32 %v4723_v0, %v5054_v29 }
 0x1e3   : > { %v3456_v50 = vpop.eup %3455  ;;  %v1594_v8 = vmul.f32 %v4550_v56, %v5019_v26  ;;  %v1829_v36 = vadd.f32 %v1797_v49, %v1726_v38  ;;  %v1525_v4 = vadd.f32 %v1493_v60, %v1423_v3  ;;  %v1695_v48 = vmul.f32 %v4663_v33, %v5038_v31 }
 0x1e4   : > { %v2326_v25 = vmul.f32 %v3456_v50, %v4902_v10  ;;  %3465 = vpow2.f32 %v2925_v52  ;;  %v2069_v59 = vmul.f32 %v4767_v23, %v2030_v12  ;;  %v1190_v10 = vmul.f32 %v5082_v32, %v4979_v39  ;;  %v1864_v52 = vld [vmem:[#allocation2 + $0x181] sm:$0xff] }
 0x1e5   : > { %v1291_v19 = vmul.f32 %v5089_v1, %v4987_v16  ;;  %v1930_v58 = vadd.f32 %v1898_v55, %v1829_v36  ;;  %v1626_v2 = vadd.f32 %v1594_v8, %v1525_v4  ;;  %v1798_v35 = vmul.f32 %v4674_v63, %v5069_v11  ;;  %v1965_v12 = vld [vmem:[#allocation2 + $0x182] sm:$0xff] }
 0x1e6   : > { %v3458_v37 = vpop.eup %3457  ;;  %3142 = vmatmul.mubr.f32.gmra.mxu1 %v2326_v25  ;;  %v1392_v39 = vmul.f32 %v5098_v61, %v4989_v7  ;;  %v5103_v41 = vadd.f32 %v4787_v24, %v2069_v59  ;;  %v1494_v45 = vmul.f32 %v4633_v43, %v5040_v28  ;;  %v1899_v51 = vmul.f32 %v4581_v46, %v5075_v42 }
 0x1e7   : > { %v2233_v17 = vadd.f32 1.0, %v3458_v37  ;;  %v1323_v16 = vadd.f32 %v1291_v19, %v1190_v10  ;;  %v2031_v47 = vadd.f32 %v1999_v53, %v1930_v58  ;;  %v1727_v5 = vadd.f32 %v1695_v48, %v1626_v2  ;;  %v5136_v19 = vld [vmem:[%s5422_s4 + $0x5] ss:$0 sm:$0xff]  ;;  %v1764_v58 = vld [vmem:[#allocation2 + $0x188] sm:$0xff] }
 0x1e8   : > { %v2000_v20 = vmul.f32 %v4723_v0, %v5077_v44  ;;  %v2926_v30 = vmul.f32 -1.442695, %v5103_v41  ;;  %v1595_v54 = vmul.f32 %v4550_v56, %v5052_v9  ;;  %v1191_v15 = vmul.f32 %v5082_v32, %v5011_v14 }
 0x1e9   : > { %3467 = vrcp.f32 %v2233_v17  ;;  %v1424_v7 = vadd.f32 %v1392_v39, %v1323_v16  ;;  %v3460_v34 = vpop.eup %3459  ;;  %v2070_v27 = vmul.f32 %v4767_v23, %v2031_v47  ;;  %v1830_v62 = vadd.f32 %v1798_v35, %v1727_v5 }
 0x1ea   : > { %v1292_v21 = vmul.f32 %v5089_v1, %v5019_v26  ;;  %v2327_v49 = vmul.f32 %v3460_v34, %v4940_v57  ;;  %3469 = vpow2.f32 %v2926_v30  ;;  %v1393_v38 = vmul.f32 %v5098_v61, %v5038_v31 }
 0x1eb   : > { %v1526_v60 = vadd.f32 %v1494_v45, %v1424_v7  ;;  %v3462_v56 = vpop.eup %3461  ;;  %v5123_v3 = vadd.f32 %v4787_v24, %v2070_v27  ;;  %v1931_v50 = vadd.f32 %v1899_v51, %v1830_v62  ;;  %v1495_v14 = vmul.f32 %v4633_v43, %v5069_v11  ;;  %v1865_v45 = vld [vmem:[#allocation2 + $0x189] sm:$0xff] }
 0x1ec   : > { %v1324_v55 = vadd.f32 %v1292_v21, %v1191_v15  ;;  %3144 = vmatprep.mubr.f32.mxu1 %v2327_v49  ;;  %v2234_v26 = vadd.f32 1.0, %v3462_v56  ;;  %v1696_v57 = vmul.f32 %v4663_v33, %v5054_v29  ;;  %v1799_v8 = vmul.f32 %v4674_v63, %v1763_v6  ;;  %v1966_v7 = vld [vmem:[#allocation2 + $0x18a] sm:$0xff]  ;;  %v3516_v15 = vld [vmem:[%s5422_s4 + $0x9] ss:$0 sm:$0xff] }
 0x1ed   : > { %v1627_v53 = vadd.f32 %v1595_v54, %v1526_v60  ;;  %v2927_v31 = vmul.f32 -1.442695, %v5123_v3  ;;  %v2032_v25 = vadd.f32 %v2000_v20, %v1931_v50  ;;  %v1900_v36 = vmul.f32 %v4581_v46, %v1864_v52 }
 0x1ee   : > { %v1425_v4 = vadd.f32 %v1393_v38, %v1324_v55  ;;  %v3464_v59 = vpop.eup %3463  ;;  %3471 = vrcp.f32 %v2234_v26  ;;  %v2001_v10 = vmul.f32 %v4723_v0, %v1965_v12  ;;  %v1596_v37 = vmul.f32 %v5136_v19, %v5075_v42 }
 0x1ef   : > { %v1728_v48 = vadd.f32 %v1696_v57, %v1627_v53  ;;  %v2328_v2 = vmul.f32 %v3464_v59, %v4964_v18  ;;  %3473 = vpow2.f32 %v2927_v31  ;;  %v2071_v46 = vmul.f32 %v4767_v23, %v2032_v25  ;;  %v1866_v31 = vld [vmem:[#allocation2 + $0x199] sm:$0xff] }
 0x1f0   : > { %v1527_v35 = vadd.f32 %v1495_v14, %v1425_v4  ;;  %v1697_v16 = vmul.f32 %v4663_v33, %v5077_v44  ;;  %v1192_v47 = vmul.f32 %v5082_v32, %v5040_v28  ;;  %v1293_v5 = vmul.f32 %v5089_v1, %v5052_v9  ;;  %v1967_v59 = vld [vmem:[#allocation2 + $0x19a] sm:$0xff] }
 0x1f1   : > { %v3466_v39 = vpop.eup %3465  ;;  %v1831_v17 = vadd.f32 %v1799_v8, %v1728_v48  ;;  %3145 = vmatmul.mubr.f32.gmra.mxu1 %v2328_v2  ;;  %v5149_v18 = vadd.f32 %v4787_v24, %v2071_v46  ;;  %v1800_v30 = vmul.f32 %v4674_v63, %v1764_v58  ;;  %v1394_v27 = vmul.f32 %v5098_v61, %v5054_v29 }
 0x1f2   : > { %v2235_v51 = vadd.f32 1.0, %v3466_v39  ;;  %v1628_v20 = vadd.f32 %v1596_v37, %v1527_v35  ;;  %v1325_v34 = vadd.f32 %v1293_v5, %v1192_v47  ;;  %v1496_v62 = vmul.f32 %v4633_v43, %v1763_v6 }
 0x1f3   : > { %v1932_v54 = vadd.f32 %v1900_v36, %v1831_v17  ;;  %v2928_v28 = vmul.f32 -1.442695, %v5149_v18  ;;  %v1901_v21 = vmul.f32 %v3516_v15, %v1865_v45  ;;  %v2002_v60 = vmul.f32 %v4723_v0, %v1966_v7  ;;  %v3518_v36 = vld [vmem:[#allocation2] sm:$0xff] }
 0x1f4   : > { %3475 = vrcp.f32 %v2235_v51  ;;  %v1729_v9 = vadd.f32 %v1697_v16, %v1628_v20  ;;  %v1426_v38 = vadd.f32 %v1394_v27, %v1325_v34  ;;  %v1597_v56 = vmul.f32 %v5136_v19, %v1864_v52  ;;  %v1867_v16 = vld [vmem:[#allocation2 + $0x1a1] sm:$0xff] }
 0x1f5   : > { %v2033_v49 = vadd.f32 %v2001_v10, %v1932_v54  ;;  %3477 = vpow2.f32 %v2928_v28  ;;  %v1193_v43 = vmul.f32 %v5082_v32, %v5069_v11  ;;  %v1294_v6 = vmul.f32 %v5089_v1, %v5075_v42  ;;  %v3517_v11 = vld [vmem:[%s5422_s4 + $0x4] ss:$0 sm:$0xff] }
 0x1f6   : > { %v3468_v50 = vpop.eup %3467  ;;  %v1832_v29 = vadd.f32 %v1800_v30, %v1729_v9  ;;  %v1528_v26 = vadd.f32 %v1496_v62, %v1426_v38  ;;  %v1698_v53 = vmul.f32 %v4663_v33, %v1965_v12  ;;  %v1395_v25 = vmul.f32 %v5098_v61, %v5077_v44  ;;  %v1968_v54 = vld [vmem:[#allocation2 + $0x1a2] sm:$0xff] }
 0x1f7   : > { %v2329_v55 = vmul.f32 %v3468_v50, %v4998_v13  ;;  %v2072_v14 = vmul.f32 %v4767_v23, %v2033_v49  ;;  %v3470_v57 = vpop.eup %3469  ;;  %v1326_v52 = vadd.f32 %v1294_v6, %v1193_v43  ;;  %v1497_v32 = vmul.f32 %v3517_v11, %v1764_v58 }
 0x1f8   : > { %v1933_v8 = vadd.f32 %v1901_v21, %v1832_v29  ;;  %v2236_v42 = vadd.f32 1.0, %v3470_v57  ;;  %v1629_v1 = vadd.f32 %v1597_v56, %v1528_v26  ;;  %v1801_v12 = vmul.f32 %v3518_v36, %v4674_v63  ;;  %v5197_v36 = vld [vmem:[%s5426_s8] ss:$0 sm:$0xff] }
 0x1f9   : > { %3147 = vmatprep.mubr.f32.mxu1 %v2329_v55  ;;  %v5174_v13 = vadd.f32 %v4787_v24, %v2072_v14  ;;  %v1427_v48 = vadd.f32 %v1395_v25, %v1326_v52  ;;  %v1902_v10 = vmul.f32 %v3516_v15, %v1866_v31  ;;  %v1598_v46 = vmul.f32 %v5136_v19, %v1865_v45 }
 0x1fa   : > { %v2034_v4 = vadd.f32 %v2002_v60, %v1933_v8  ;;  %3479 = vrcp.f32 %v2236_v42  ;;  %v1730_v61 = vadd.f32 %v1698_v53, %v1629_v1  ;;  %v2003_v63 = vmul.f32 %v4723_v0, %v1967_v59 }
 0x1fb   : > { %v2929_v44 = vmul.f32 -1.442695, %v5174_v13  ;;  %v3472_v37 = vpop.eup %3471  ;;  %v1529_v2 = vadd.f32 %v1497_v32, %v1427_v48  ;;  %v1699_v20 = vmul.f32 %v4663_v33, %v1966_v7  ;;  %v1903_v45 = vmul.f32 %v3516_v15, %v1867_v16  ;;  %v3521_v16 = vld [vmem:[%s3810_s11 + $0x18] sm:$0xff] }
 0x1fc   : > { %v2073_v58 = vmul.f32 %v4767_v23, %v2034_v4  ;;  %v3474_v35 = vpop.eup %3473  ;;  %v2330_v39 = vmul.f32 %v3472_v37, %v5026_v40  ;;  %v1833_v17 = vadd.f32 %v1801_v12, %v1730_v61  ;;  %v2004_v9 = vmul.f32 %v4723_v0, %v1968_v54  ;;  %v3519_v61 = vld [vmem:[%s3810_s11 + $0x8] sm:$0xff] }
 0x1fd   : > { %3481 = vpow2.f32 %v2929_v44  ;;  %v2237_v47 = vadd.f32 1.0, %v3474_v35  ;;  %v1630_v51 = vadd.f32 %v1598_v46, %v1529_v2 }
 0x1fe   : > { %v2112_v5 = vadd.f32 %v4787_v24, %v2073_v58  ;;  %3148 = vmatmul.mubr.f32.gmra.mxu1 %v2330_v39  ;;  %v1934_v30 = vadd.f32 %v1902_v10, %v1833_v17  ;;  %v3520_v58 = vld [vmem:[%s3810_s11] sm:$0xff] }
 0x1ff   : > { %3483 = vrcp.f32 %v2237_v47  ;;  %v1731_v19 = vadd.f32 %v1699_v20, %v1630_v51  ;;  %v3522_v51 = vld [vmem:[%s3810_s11 + $0x10] sm:$0xff] }
 0x200   : > { %v2930_v34 = vmul.f32 -1.442695, %v2112_v5  ;;  %v2035_v40 = vadd.f32 %v2003_v63, %v1934_v30 }
 0x201   : > { %v3476_v27 = vpop.eup %3475  ;;  %v1834_v28 = vadd.f32 %v1801_v12, %v1731_v19  ;;  %v5202_v12 = vld [vmem:[%s5427_s9] ss:$0 sm:$0xff] }
 0x202   : > { %v2331_v62 = vmul.f32 %v3476_v27, %v5050_v22  ;;  %3485 = vpow2.f32 %v2930_v34  ;;  %v3478_v21 = vpop.eup %3477  ;;  %v2074_v49 = vmul.f32 %v4767_v23, %v2035_v40  ;;  %v3523_v27 = vld [vmem:[%s3810_s11 + $0x28] sm:$0xff] }
 0x203   : > { %v2238_v33 = vadd.f32 1.0, %v3478_v21  ;;  %v1935_v7 = vadd.f32 %v1903_v45, %v1834_v28  ;;  %v3524_v28 = vld [vmem:[%s3810_s11 + $0x20] sm:$0xff] }
 0x204   : > { %3150 = vmatprep.mubr.f32.mxu1 %v2331_v62  ;;  %v2113_v60 = vadd.f32 %v4787_v24, %v2074_v49 }
 0x205   : > { %3487 = vrcp.f32 %v2238_v33  ;;  %v2036_v38 = vadd.f32 %v2004_v9, %v1935_v7 }
 0x206   : > { %v2931_v56 = vmul.f32 -1.442695, %v2113_v60 }
 0x207   : > { %v3480_v15 = vpop.eup %3479  ;;  %v2075_v50 = vmul.f32 %v4767_v23, %v2036_v38  ;;  %v3525_v38 = vld [vmem:[%s3810_s11 + $0x38] sm:$0xff] }
 0x208   : > { %v2332_v22 = vmul.f32 %v3480_v15, %v5103_v41  ;;  %3489 = vpow2.f32 %v2931_v56 }
 0x209   : > { %v2114_v0 = vadd.f32 %v4787_v24, %v2075_v50  ;;  %v3526_v50 = vld [vmem:[%s3810_s11 + $0x30] sm:$0xff] }
 0x20a   : > { %v3482_v29 = vpop.eup %3481  ;;  %3151 = vmatmul.mubr.f32.gmra.mxu1 %v2332_v22 }
 0x20b   : > { %v2239_v43 = vadd.f32 1.0, %v3482_v29  ;;  %v2932_v6 = vmul.f32 -1.442695, %v2114_v0 }
 0x20c   : > { %v3484_v55 = vpop.eup %3483 }
 0x20d   : > { %3491 = vrcp.f32 %v2239_v43  ;;  %v2333_v14 = vmul.f32 %v3484_v55, %v5123_v3 }
 0x20e   : > { %3493 = vpow2.f32 %v2932_v6 }
 0x20f   : > { %v3486_v26 = vpop.eup %3485  ;;  %3153 = vmatprep.mubr.f32.mxu1 %v2333_v14  ;;  %v3527_v14 = vld [vmem:[%s3810_s11 + $0x48] sm:$0xff] }
 0x210   : > { %v2240_v53 = vadd.f32 1.0, %v3486_v26 }
 0x212   : > { %3495 = vrcp.f32 %v2240_v53  ;;  %v3488_v57 = vpop.eup %3487 }
 0x213   : > { %v2334_v23 = vmul.f32 %v3488_v57, %v5149_v18  ;;  %v3528_v57 = vld [vmem:[%s3810_s11 + $0x40] sm:$0xff] }
 0x215   : > { %v3490_v41 = vpop.eup %3489  ;;  %3154 = vmatmul.mubr.f32.gmra.mxu1 %v2334_v23 }
 0x216   : > { %v2241_v8 = vadd.f32 1.0, %v3490_v41 }
 0x218   : > { %3497 = vrcp.f32 %v2241_v8 }
 0x21a   : > { %v3492_v24 = vpop.eup %3491 }
 0x21b   : > { %v3494_v31 = vpop.eup %3493  ;;  %v2335_v52 = vmul.f32 %v3492_v24, %v5174_v13 }
 0x21c   : > { %v2242_v25 = vadd.f32 1.0, %v3494_v31 }
 0x21d   : > { %3156 = vmatprep.mubr.f32.mxu1 %v2335_v52 }
 0x21e   : > { %3499 = vrcp.f32 %v2242_v25  ;;  %v3529_v25 = vld [vmem:[%s3810_s11 + $0x58] sm:$0xff] }
 0x21f   : > { %v3496_v3 = vpop.eup %3495 }
 0x220   : > { %v2336_v11 = vmul.f32 %v3496_v3, %v2112_v5 }
 0x222   : > { %3157 = vmatmul.mubr.f32.gmra.mxu1 %v2336_v11 }
 0x225   : > { %v3498_v32 = vpop.eup %3497 }
 0x226   : > { %v2337_v42 = vmul.f32 %v3498_v32, %v2113_v60  ;;  %v3530_v32 = vld [vmem:[%s3810_s11 + $0x50] sm:$0xff] }
 0x228   : > { %3159 = vmatprep.mubr.f32.mxu1 %v2337_v42 }
 0x22b   : > { %v3500_v18 = vpop.eup %3499 }
 0x22c   : > { %v2338_v1 = vmul.f32 %v3500_v18, %v2114_v0 }
 0x22e   : > { %3160 = vmatmul.mubr.f32.gmra.mxu1 %v2338_v1 }
 0x235   : > { %v3116_v13 = vpop.f32.mrf.mxu0 }
 0x236   : > { %v2588_v4 = vmul.f32 %v3116_v13, %v5197_v36 }
 0x237   : > { %v2421_v59 = vpop.f32.mrf.mxu0 }
 0x238   : > { %v2627_v48 = vadd.f32 %v5202_v12, %v2588_v4  ;;  %v2587_v44 = vmul.f32 %v5197_v36, %v2421_v59 }
 0x23a   : > { %v2659_v10 = vadd.f32 %v3519_v61, %v2627_v48  ;;  %v2626_v37 = vadd.f32 %v5202_v12, %v2587_v44  ;;  %v3531_v48 = vld [vmem:[%s3810_s11 + $0x68] sm:$0xff] }
 0x23c   : > { %2691 = vst.msk [vmem:[%s5211_s24 + $0x8] sm:$0xff] %vm414_vm0, %v2659_v10  ;;  %v2658_v2 = vadd.f32 %v3520_v58, %v2626_v37  ;;  %v3532_v10 = vld [vmem:[%s3810_s11 + $0x60] sm:$0xff] }
 0x23e   : > { %2690 = vst.msk [vmem:[%s5211_s24] sm:$0xff] %vm414_vm0, %v2658_v2 }
 0x246   : > { %v3119_v46 = vpop.f32.mrf.mxu0 }
 0x247   : > { %v2590_v35 = vmul.f32 %v3119_v46, %v5197_v36 }
 0x248   : > { %v2431_v39 = vpop.f32.mrf.mxu0 }
 0x249   : > { %v2629_v17 = vadd.f32 %v5202_v12, %v2590_v35  ;;  %v2589_v63 = vmul.f32 %v5197_v36, %v2431_v39 }
 0x24b   : > { %v2661_v47 = vadd.f32 %v3521_v16, %v2629_v17  ;;  %v2628_v5 = vadd.f32 %v5202_v12, %v2589_v63  ;;  %v3533_v17 = vld [vmem:[%s3810_s11 + $0x78] sm:$0xff] }
 0x24d   : > { %2693 = vst.msk [vmem:[%s5211_s24 + $0x18] sm:$0xff] %vm414_vm0, %v2661_v47  ;;  %v2660_v20 = vadd.f32 %v3522_v51, %v2628_v5  ;;  %v3534_v47 = vld [vmem:[%s3810_s11 + $0x70] sm:$0xff] }
 0x24f   : > { %2692 = vst.msk [vmem:[%s5211_s24 + $0x10] sm:$0xff] %vm414_vm0, %v2660_v20 }
 0x253   : > { %v3122_v30 = vpop.f32.mrf.mxu0 }
 0x254   : > { %v2592_v54 = vmul.f32 %v3122_v30, %v5197_v36 }
 0x255   : > { %v2441_v34 = vpop.f32.mrf.mxu0 }
 0x256   : > { %v2631_v19 = vadd.f32 %v5202_v12, %v2592_v54  ;;  %v2591_v45 = vmul.f32 %v5197_v36, %v2441_v34 }
 0x258   : > { %v2663_v40 = vadd.f32 %v3523_v27, %v2631_v19  ;;  %v2630_v62 = vadd.f32 %v5202_v12, %v2591_v45  ;;  %v3535_v19 = vld [vmem:[%s3810_s11 + $0x88] sm:$0xff] }
 0x25a   : > { %2695 = vst.msk [vmem:[%s5211_s24 + $0x28] sm:$0xff] %vm414_vm0, %v2663_v40  ;;  %v2662_v9 = vadd.f32 %v3524_v28, %v2630_v62  ;;  %v3536_v40 = vld [vmem:[%s3810_s11 + $0x80] sm:$0xff] }
 0x25c   : > { %2694 = vst.msk [vmem:[%s5211_s24 + $0x20] sm:$0xff] %vm414_vm0, %v2662_v9 }
 0x25e   : > { %v3125_v21 = vpop.f32.mrf.mxu1 }
 0x25f   : > { %v2594_v49 = vmul.f32 %v3125_v21, %v5197_v36 }
 0x260   : > { %v2451_v33 = vpop.f32.mrf.mxu1 }
 0x261   : > { %v2633_v7 = vadd.f32 %v5202_v12, %v2594_v49  ;;  %v2593_v60 = vmul.f32 %v5197_v36, %v2451_v33 }
 0x263   : > { %v2665_v56 = vadd.f32 %v3525_v38, %v2633_v7  ;;  %v2632_v15 = vadd.f32 %v5202_v12, %v2593_v60  ;;  %v3537_v7 = vld [vmem:[%s3810_s11 + $0x98] sm:$0xff] }
 0x265   : > { %2697 = vst.msk [vmem:[%s5211_s24 + $0x38] sm:$0xff] %vm414_vm0, %v2665_v56  ;;  %v2664_v22 = vadd.f32 %v3526_v50, %v2632_v15  ;;  %v3538_v56 = vld [vmem:[%s3810_s11 + $0x90] sm:$0xff] }
 0x267   : > { %2696 = vst.msk [vmem:[%s5211_s24 + $0x30] sm:$0xff] %vm414_vm0, %v2664_v22 }
 0x26a   : > { %v3128_v29 = vpop.f32.mrf.mxu1 }
 0x26b   : > { %v2596_v0 = vmul.f32 %v3128_v29, %v5197_v36 }
 0x26c   : > { %v2461_v43 = vpop.f32.mrf.mxu1 }
 0x26d   : > { %v2635_v6 = vadd.f32 %v5202_v12, %v2596_v0  ;;  %v2595_v55 = vmul.f32 %v5197_v36, %v2461_v43 }
 0x26f   : > { %v2667_v26 = vadd.f32 %v3527_v14, %v2635_v6  ;;  %v2634_v53 = vadd.f32 %v5202_v12, %v2595_v55  ;;  %v3539_v6 = vld [vmem:[%s3810_s11 + $0xa8] sm:$0xff] }
 0x271   : > { %2699 = vst.msk [vmem:[%s5211_s24 + $0x48] sm:$0xff] %vm414_vm0, %v2667_v26  ;;  %v2666_v23 = vadd.f32 %v3528_v57, %v2634_v53  ;;  %v3540_v26 = vld [vmem:[%s3810_s11 + $0xa0] sm:$0xff] }
 0x273   : > { %2698 = vst.msk [vmem:[%s5211_s24 + $0x40] sm:$0xff] %vm414_vm0, %v2666_v23 }
 0x275   : > { %v3131_v41 = vpop.f32.mrf.mxu1 }
 0x276   : > { %v2598_v8 = vmul.f32 %v3131_v41, %v5197_v36 }
 0x277   : > { %v2471_v24 = vpop.f32.mrf.mxu1 }
 0x278   : > { %v2637_v31 = vadd.f32 %v5202_v12, %v2598_v8  ;;  %v2597_v52 = vmul.f32 %v5197_v36, %v2471_v24 }
 0x27a   : > { %v2669_v3 = vadd.f32 %v3529_v25, %v2637_v31  ;;  %v2636_v11 = vadd.f32 %v5202_v12, %v2597_v52  ;;  %v3541_v31 = vld [vmem:[%s3810_s11 + $0xb8] sm:$0xff] }
 0x27c   : > { %2701 = vst.msk [vmem:[%s5211_s24 + $0x58] sm:$0xff] %vm414_vm0, %v2669_v3  ;;  %v2668_v42 = vadd.f32 %v3530_v32, %v2636_v11  ;;  %v3542_v3 = vld [vmem:[%s3810_s11 + $0xb0] sm:$0xff] }
 0x27e   : > { %2700 = vst.msk [vmem:[%s5211_s24 + $0x50] sm:$0xff] %vm414_vm0, %v2668_v42 }
 0x281   : > { %v3134_v18 = vpop.f32.mrf.mxu1 }
 0x282   : > { %v2600_v1 = vmul.f32 %v3134_v18, %v5197_v36 }
 0x283   : > { %v2481_v13 = vpop.f32.mrf.mxu1 }
 0x284   : > { %v2639_v4 = vadd.f32 %v5202_v12, %v2600_v1  ;;  %v2599_v59 = vmul.f32 %v5197_v36, %v2481_v13 }
 0x286   : > { %v2671_v44 = vadd.f32 %v3531_v48, %v2639_v4  ;;  %v2638_v61 = vadd.f32 %v5202_v12, %v2599_v59  ;;  %v3543_v4 = vld [vmem:[%s3810_s11 + $0xc8] sm:$0xff] }
 0x288   : > { %2703 = vst.msk [vmem:[%s5211_s24 + $0x68] sm:$0xff] %vm414_vm0, %v2671_v44  ;;  %v2670_v37 = vadd.f32 %v3532_v10, %v2638_v61  ;;  %v3544_v44 = vld [vmem:[%s3810_s11 + $0xc0] sm:$0xff] }
 0x28a   : > { %2702 = vst.msk [vmem:[%s5211_s24 + $0x60] sm:$0xff] %vm414_vm0, %v2670_v37 }
 0x28e   : > { %v3137_v58 = vpop.f32.mrf.mxu1 }
 0x28f   : > { %v2602_v2 = vmul.f32 %v3137_v58, %v5197_v36 }
 0x290   : > { %v2491_v46 = vpop.f32.mrf.mxu1 }
 0x291   : > { %v2641_v35 = vadd.f32 %v5202_v12, %v2602_v2  ;;  %v2601_v39 = vmul.f32 %v5197_v36, %v2491_v46 }
 0x293   : > { %v2673_v63 = vadd.f32 %v3533_v17, %v2641_v35  ;;  %v2640_v16 = vadd.f32 %v5202_v12, %v2601_v39  ;;  %v3545_v35 = vld [vmem:[%s3810_s11 + $0xd8] sm:$0xff] }
 0x295   : > { %2705 = vst.msk [vmem:[%s5211_s24 + $0x78] sm:$0xff] %vm414_vm0, %v2673_v63  ;;  %v2672_v5 = vadd.f32 %v3534_v47, %v2640_v16  ;;  %v3546_v63 = vld [vmem:[%s3810_s11 + $0xd0] sm:$0xff] }
 0x297   : > { %2704 = vst.msk [vmem:[%s5211_s24 + $0x70] sm:$0xff] %vm414_vm0, %v2672_v5 }
 0x29b   : > { %v3140_v51 = vpop.f32.mrf.mxu1 }
 0x29c   : > { %v2604_v20 = vmul.f32 %v3140_v51, %v5197_v36 }
 0x29d   : > { %v2501_v30 = vpop.f32.mrf.mxu1 }
 0x29e   : > { %v2643_v54 = vadd.f32 %v5202_v12, %v2604_v20  ;;  %v2603_v34 = vmul.f32 %v5197_v36, %v2501_v30 }
 0x2a0   : > { %v2675_v45 = vadd.f32 %v3535_v19, %v2643_v54  ;;  %v2642_v27 = vadd.f32 %v5202_v12, %v2603_v34  ;;  %v3547_v54 = vld [vmem:[%s3810_s11 + $0xe8] sm:$0xff] }
 0x2a2   : > { %2707 = vst.msk [vmem:[%s5211_s24 + $0x88] sm:$0xff] %vm414_vm0, %v2675_v45  ;;  %v2674_v62 = vadd.f32 %v3536_v40, %v2642_v27  ;;  %v3548_v45 = vld [vmem:[%s3810_s11 + $0xe0] sm:$0xff] }
 0x2a4   : > { %2706 = vst.msk [vmem:[%s5211_s24 + $0x80] sm:$0xff] %vm414_vm0, %v2674_v62 }
 0x2a6   : > { %v3143_v28 = vpop.f32.mrf.mxu1 }
 0x2a7   : > { %v2606_v9 = vmul.f32 %v3143_v28, %v5197_v36 }
 0x2a8   : > { %v2511_v21 = vpop.f32.mrf.mxu1 }
 0x2a9   : > { %v2645_v49 = vadd.f32 %v5202_v12, %v2606_v9  ;;  %v2605_v33 = vmul.f32 %v5197_v36, %v2511_v21 }
 0x2ab   : > { %v2677_v60 = vadd.f32 %v3537_v7, %v2645_v49  ;;  %v2644_v38 = vadd.f32 %v5202_v12, %v2605_v33  ;;  %v3549_v49 = vld [vmem:[%s3810_s11 + $0xf8] sm:$0xff] }
 0x2ad   : > { %2709 = vst.msk [vmem:[%s5211_s24 + $0x98] sm:$0xff] %vm414_vm0, %v2677_v60  ;;  %v2676_v15 = vadd.f32 %v3538_v56, %v2644_v38  ;;  %v3550_v60 = vld [vmem:[%s3810_s11 + $0xf0] sm:$0xff] }
 0x2af   : > { %2708 = vst.msk [vmem:[%s5211_s24 + $0x90] sm:$0xff] %vm414_vm0, %v2676_v15 }
 0x2b1   : > { %v3146_v50 = vpop.f32.mrf.mxu1 }
 0x2b2   : > { %v2608_v22 = vmul.f32 %v3146_v50, %v5197_v36 }
 0x2b3   : > { %v2521_v29 = vpop.f32.mrf.mxu1 }
 0x2b4   : > { %v2647_v0 = vadd.f32 %v5202_v12, %v2608_v22  ;;  %v2607_v43 = vmul.f32 %v5197_v36, %v2521_v29 }
 0x2b6   : > { %v2679_v55 = vadd.f32 %v3539_v6, %v2647_v0  ;;  %v2646_v14 = vadd.f32 %v5202_v12, %v2607_v43 }
 0x2b8   : > { %2711 = vst.msk [vmem:[%s5211_s24 + $0xa8] sm:$0xff] %vm414_vm0, %v2679_v55  ;;  %v2678_v53 = vadd.f32 %v3540_v26, %v2646_v14 }
 0x2ba   : > { %2710 = vst.msk [vmem:[%s5211_s24 + $0xa0] sm:$0xff] %vm414_vm0, %v2678_v53 }
 0x2be   : > { %v3149_v57 = vpop.f32.mrf.mxu1 }
 0x2bf   : > { %v2610_v23 = vmul.f32 %v3149_v57, %v5197_v36 }
 0x2c0   : > { %v2531_v41 = vpop.f32.mrf.mxu1 }
 0x2c1   : > { %v2649_v8 = vadd.f32 %v5202_v12, %v2610_v23  ;;  %v2609_v24 = vmul.f32 %v5197_v36, %v2531_v41 }
 0x2c3   : > { %v2681_v52 = vadd.f32 %v3541_v31, %v2649_v8  ;;  %v2648_v25 = vadd.f32 %v5202_v12, %v2609_v24 }
 0x2c5   : > { %2713 = vst.msk [vmem:[%s5211_s24 + $0xb8] sm:$0xff] %vm414_vm0, %v2681_v52  ;;  %v2680_v11 = vadd.f32 %v3542_v3, %v2648_v25 }
 0x2c7   : > { %2712 = vst.msk [vmem:[%s5211_s24 + $0xb0] sm:$0xff] %vm414_vm0, %v2680_v11 }
 0x2ca   : > { %v3152_v32 = vpop.f32.mrf.mxu1 }
 0x2cb   : > { %v2612_v42 = vmul.f32 %v3152_v32, %v5197_v36 }
 0x2cc   : > { %v2541_v18 = vpop.f32.mrf.mxu1 }
 0x2cd   : > { %v2651_v1 = vadd.f32 %v5202_v12, %v2612_v42  ;;  %v2611_v13 = vmul.f32 %v5197_v36, %v2541_v18 }
 0x2cf   : > { %v2683_v59 = vadd.f32 %v3543_v4, %v2651_v1  ;;  %v2650_v48 = vadd.f32 %v5202_v12, %v2611_v13 }
 0x2d1   : > { %2715 = vst.msk [vmem:[%s5211_s24 + $0xc8] sm:$0xff] %vm414_vm0, %v2683_v59  ;;  %v2682_v61 = vadd.f32 %v3544_v44, %v2650_v48 }
 0x2d3   : > { %2714 = vst.msk [vmem:[%s5211_s24 + $0xc0] sm:$0xff] %vm414_vm0, %v2682_v61 }
 0x2d5   : > { %v3155_v10 = vpop.f32.mrf.mxu1 }
 0x2d6   : > { %v2614_v37 = vmul.f32 %v3155_v10, %v5197_v36 }
 0x2d7   : > { %v2551_v58 = vpop.f32.mrf.mxu1 }
 0x2d8   : > { %v2653_v2 = vadd.f32 %v5202_v12, %v2614_v37  ;;  %v2613_v46 = vmul.f32 %v5197_v36, %v2551_v58 }
 0x2da   : > { %v2685_v39 = vadd.f32 %v3545_v35, %v2653_v2  ;;  %v2652_v17 = vadd.f32 %v5202_v12, %v2613_v46 }
 0x2dc   : > { %2717 = vst.msk [vmem:[%s5211_s24 + $0xd8] sm:$0xff] %vm414_vm0, %v2685_v39  ;;  %v2684_v16 = vadd.f32 %v3546_v63, %v2652_v17 }
 0x2de   : > { %2716 = vst.msk [vmem:[%s5211_s24 + $0xd0] sm:$0xff] %vm414_vm0, %v2684_v16 }
 0x2e2   : > { %v3158_v47 = vpop.f32.mrf.mxu1 }
 0x2e3   : > { %v2616_v5 = vmul.f32 %v3158_v47, %v5197_v36 }
 0x2e4   : > { %v2561_v51 = vpop.f32.mrf.mxu1 }
 0x2e5   : > { %v2655_v20 = vadd.f32 %v5202_v12, %v2616_v5  ;;  %v2615_v30 = vmul.f32 %v5197_v36, %v2561_v51 }
 0x2e7   : > { %v2687_v34 = vadd.f32 %v3547_v54, %v2655_v20  ;;  %v2654_v19 = vadd.f32 %v5202_v12, %v2615_v30 }
 0x2e9   : > { %2719 = vst.msk [vmem:[%s5211_s24 + $0xe8] sm:$0xff] %vm414_vm0, %v2687_v34  ;;  %v2686_v27 = vadd.f32 %v3548_v45, %v2654_v19 }
 0x2eb   : > { %2718 = vst.msk [vmem:[%s5211_s24 + $0xe0] sm:$0xff] %vm414_vm0, %v2686_v27 }
 0x2ee   : > { %v3161_v40 = vpop.f32.mrf.mxu1 }
 0x2ef   : > { %v2618_v62 = vmul.f32 %v3161_v40, %v5197_v36 }
 0x2f0   : > { %v2571_v28 = vpop.f32.mrf.mxu1 }
 0x2f1   : > { %v2657_v9 = vadd.f32 %v5202_v12, %v2618_v62  ;;  %v2617_v21 = vmul.f32 %v5197_v36, %v2571_v28 }
 0x2f3   : > { %v2689_v33 = vadd.f32 %v3549_v49, %v2657_v9  ;;  %v2656_v7 = vadd.f32 %v5202_v12, %v2617_v21 }
 0x2f5   : > { %2721 = vst.msk [vmem:[%s5211_s24 + $0xf8] sm:$0xff] %vm414_vm0, %v2689_v33  ;;  %v2688_v36 = vadd.f32 %v3550_v60, %v2656_v7 }
 0x2f7   : > { %2720 = vst.msk [vmem:[%s5211_s24 + $0xf0] sm:$0xff] %vm414_vm0, %v2688_v36 }
 0x2f8   : > { %3592 = shalt.err (!%p3589_p10)
}
 0x2f9   : > { %s3593_s11 = scalar_lea.hbm %s5368_s30, 4096  ;;  %s3597_s24 = scalar_lea.hbm %s5428_s10, 8192 }
 0x2fa   : > { %p3594_p0 = scmp.ne.s32.totalorder %s5368_s30, %s3593_s11  ;;  %p3598_p1 = scmp.lt.s32.totalorder %s5368_s30, %s5428_s10 }
 0x2fb   : > { %p3599_p3 = scmp.lt.s32.totalorder %s3597_s24, %s3593_s11 }
 0x2fc   : > { %p3595_p2 = pnand %p3594_p0, %p5443_p12 }
 0x2fd   : > { %p3600_p6 = por %p3599_p3, %p3598_p1 }
 0x2fe   : > { %p3596_p9 = pneg %p3595_p2 }
 0x300   : > { %p3601_p11 = pnand %p3600_p6, %p3596_p9 }
 0x302   : > { %3604 = shalt.err (!%p3601_p11)
}
 0x303   : > { %s3650_s15 = smov 128   ;;  %s3651_s23 = smov 8  }
 0x304   : > { %3196 = dma.vmem_to_hbm [thread:$0]  (%p5443_p12), %s5370_s18, 4096, %s5368_s30, %s2723_s17, %s3650_s15, %s3650_s15, %s3651_s23  }
 0x305 PF: > { %s2751_s22 = sand.u32 1, %s3631_s13   ;;  %p5444_p13 = scmp.ne.s32.totalorder %s5440_s26, 0 }
 0x306   : > { %p5445_p4 = scmp.ge.s32.totalorder %s3643_s16, 2  ;;  %s2752_s12 = scalar_lea.sflag [#allocation5], %s2751_s22 }
 0x308   : > { %p3203_p5 = pnand %p5445_p4, %p5444_p13 }
 0x30a   : > { %p3204_p7 = pneg %p3203_p5 }
 0x30c   : > { %3626 = dma.done.wait (%p3204_p7), %s2752_s12, 4096  }
 0x30d   : > { %3628 = vsyncadd (%p3204_p7), %s2752_s12, 4294963200  ;;  %s5446_s16 = sld [smem:[#allocation10_spill]]  ;;  %s5449_s13 = smov %s3635_s14 }
 0x30e   : > { %s5447_s20 = sld [smem:[#allocation9_spill]] }
 0x30f   : > { %s5448_s15 = sld [smem:[#allocation11_spill]] }
 0x313   : > { %p23_p8 = scmp.ge.s32.totalorder %s5446_s16, 4  }
 0x314   : > { %s5450_s14 = smov %s5447_s20 }
 0x315   :  { %25 = sbr.rel (!%p23_p8) target bundleno = 5 (0x5), region = 109 }
 0x31a   :  { %2757 = vsyncpa [#allocation4], 1 }
 0x31b   :  { %2759 = vsyncpa [#allocation4 + $0x1], 1 }
 0x31c   :  { %2760 = vsyncpa [#allocation5], 1 }
 0x31d   :  { %2762 = vsyncpa [#allocation5 + $0x1], 1 }

</bundles_post_ra>
